<compile_context>
chip_gen: v7x
topology: tpu7x:2x2x1
jax: 0.10.0
libtpu: 0.0.40
codegen_flags: <defaults>
</compile_context>

<pallas_src>
import functools

import jax
import jax.numpy as jnp
from jax.experimental import pallas as pl
from jax.experimental.pallas import tpu as pltpu


# ----------------------------- in-kernel helpers --------------------------- #

def _layer_norm(x, gamma, beta):
    # x: (N, D) f32; gamma/beta: (1, D) f32. Biased variance, eps=1e-6.
    mean = jnp.mean(x, axis=-1, keepdims=True)
    xc = x - mean
    var = jnp.mean(xc * xc, axis=-1, keepdims=True)
    return xc * jax.lax.rsqrt(var + 1e-6) * gamma + beta


def _attention_heads(q, k, v, bias, n_heads):
    """q: (Sq, D), k/v: (Sk, D), bias: (Sq, Sk) or (1, Sk) additive f32."""
    d_model = q.shape[-1]
    dk = d_model // n_heads
    scale = 1.0 / float(dk) ** 0.5
    outs = []
    for head in range(n_heads):                      # static unroll, plain 2D matmuls
        lo = head * dk
        qh = q[:, lo:lo + dk] * scale                # scale folded into Q (O(Sq*dk))
        kh = k[:, lo:lo + dk]
        vh = v[:, lo:lo + dk]
        s = jnp.dot(qh, kh.T, preferred_element_type=jnp.float32) + bias
        m = jnp.max(s, axis=-1, keepdims=True)
        p = jnp.exp(s - m)
        p = p * pl.reciprocal(jnp.sum(p, axis=-1, keepdims=True), approx=True)
        outs.append(jnp.dot(p, vh, preferred_element_type=jnp.float32))
    return jnp.concatenate(outs, axis=-1)            # (Sq, D)


# ----------------------------- Pallas kernels ------------------------------ #

def self_attn_sublayer_kernel(x_ref, bias_ref, g_ref, b_ref,
                              wqkv_ref, bqkv_ref, wo_ref, bo_ref, o_ref,
                              *, n_heads):
    x = x_ref[0]                                     # (S, D) f32
    d_model = x.shape[-1]
    y = _layer_norm(x, g_ref[...], b_ref[...])
    qkv = jnp.dot(y.astype(jnp.bfloat16), wqkv_ref[...],
                  preferred_element_type=jnp.float32) + bqkv_ref[...]
    q = qkv[:, :d_model]
    k = qkv[:, d_model:2 * d_model]
    v = qkv[:, 2 * d_model:]
    attn = _attention_heads(q, k, v, bias_ref[0], n_heads)
    out = jnp.dot(attn.astype(jnp.bfloat16), wo_ref[...],
                  preferred_element_type=jnp.float32) + bo_ref[...]
    o_ref[0, :, :] = x + out


def cross_attn_sublayer_kernel(x_ref, mem_ref, bias_ref, g_ref, b_ref,
                               wq_ref, bq_ref, wkv_ref, bkv_ref, wo_ref, bo_ref,
                               o_ref, *, n_heads):
    x = x_ref[0]                                     # (S, D) f32
    mem = mem_ref[0]                                 # (Sk, D) f32
    d_model = x.shape[-1]
    y = _layer_norm(x, g_ref[...], b_ref[...])
    q = jnp.dot(y.astype(jnp.bfloat16), wq_ref[...],
                preferred_element_type=jnp.float32) + bq_ref[...]
    kv = jnp.dot(mem.astype(jnp.bfloat16), wkv_ref[...],
                 preferred_element_type=jnp.float32) + bkv_ref[...]
    k = kv[:, :d_model]
    v = kv[:, d_model:]
    attn = _attention_heads(q, k, v, bias_ref[0], n_heads)
    out = jnp.dot(attn.astype(jnp.bfloat16), wo_ref[...],
                  preferred_element_type=jnp.float32) + bo_ref[...]
    o_ref[0, :, :] = x + out


def ffn_sublayer_kernel(x_ref, g_ref, b_ref, w1_ref, b1_ref, w2_ref, b2_ref, o_ref):
    x = x_ref[...]                                   # (Tn, D) f32
    y = _layer_norm(x, g_ref[...], b_ref[...])
    h = jnp.dot(y.astype(jnp.bfloat16), w1_ref[...],
                preferred_element_type=jnp.float32) + b1_ref[...]
    h = jnp.maximum(h, 0.0)                          # ReLU
    out = jnp.dot(h.astype(jnp.bfloat16), w2_ref[...],
                  preferred_element_type=jnp.float32) + b2_ref[...]
    o_ref[...] = x + out


# ----------------------------- pallas_call wrappers ------------------------ #

def self_attn_sublayer(x, tgt_bias, g, b, wqkv, bqkv, wo, bo, n_heads):
    B, S, D = x.shape
    kern = functools.partial(self_attn_sublayer_kernel, n_heads=n_heads)
    return pl.pallas_call(
        kern,
        out_shape=jax.ShapeDtypeStruct((B, S, D), jnp.float32),
        grid=(B,),
        in_specs=[
            pl.BlockSpec((1, S, D), lambda i: (i, 0, 0)),
            pl.BlockSpec((1, S, S), lambda i: (i, 0, 0)),
            pl.BlockSpec((1, D), lambda i: (0, 0)),
            pl.BlockSpec((1, D), lambda i: (0, 0)),
            pl.BlockSpec((D, 3 * D), lambda i: (0, 0)),
            pl.BlockSpec((1, 3 * D), lambda i: (0, 0)),
            pl.BlockSpec((D, D), lambda i: (0, 0)),
            pl.BlockSpec((1, D), lambda i: (0, 0)),
        ],
        out_specs=pl.BlockSpec((1, S, D), lambda i: (i, 0, 0)),
        compiler_params=pltpu.CompilerParams(dimension_semantics=("parallel",)),
    )(x, tgt_bias, g, b, wqkv, bqkv, wo, bo)


def cross_attn_sublayer(x, memory, src_bias, g, b, wq, bq, wkv, bkv, wo, bo, n_heads):
    B, S, D = x.shape
    Sk = memory.shape[1]
    kern = functools.partial(cross_attn_sublayer_kernel, n_heads=n_heads)
    return pl.pallas_call(
        kern,
        out_shape=jax.ShapeDtypeStruct((B, S, D), jnp.float32),
        grid=(B,),
        in_specs=[
            pl.BlockSpec((1, S, D), lambda i: (i, 0, 0)),
            pl.BlockSpec((1, Sk, D), lambda i: (i, 0, 0)),
            pl.BlockSpec((1, 1, Sk), lambda i: (i, 0, 0)),
            pl.BlockSpec((1, D), lambda i: (0, 0)),
            pl.BlockSpec((1, D), lambda i: (0, 0)),
            pl.BlockSpec((D, D), lambda i: (0, 0)),
            pl.BlockSpec((1, D), lambda i: (0, 0)),
            pl.BlockSpec((D, 2 * D), lambda i: (0, 0)),
            pl.BlockSpec((1, 2 * D), lambda i: (0, 0)),
            pl.BlockSpec((D, D), lambda i: (0, 0)),
            pl.BlockSpec((1, D), lambda i: (0, 0)),
        ],
        out_specs=pl.BlockSpec((1, S, D), lambda i: (i, 0, 0)),
        compiler_params=pltpu.CompilerParams(dimension_semantics=("parallel",)),
    )(x, memory, src_bias, g, b, wq, bq, wkv, bkv, wo, bo)


def _token_tile(n):
    for t in (512, 256, 128):
        if n % t == 0:
            return t
    return n


def ffn_sublayer(x, g, b, w1, b1, w2, b2):
    B, S, D = x.shape
    n = B * S
    dff = w1.shape[1]
    tn = _token_tile(n)
    x2 = x.reshape(n, D)
    out = pl.pallas_call(
        ffn_sublayer_kernel,
        out_shape=jax.ShapeDtypeStruct((n, D), jnp.float32),
        grid=(n // tn,),
        in_specs=[
            pl.BlockSpec((tn, D), lambda i: (i, 0)),
            pl.BlockSpec((1, D), lambda i: (0, 0)),
            pl.BlockSpec((1, D), lambda i: (0, 0)),
            pl.BlockSpec((D, dff), lambda i: (0, 0)),
            pl.BlockSpec((1, dff), lambda i: (0, 0)),
            pl.BlockSpec((dff, D), lambda i: (0, 0)),
            pl.BlockSpec((1, D), lambda i: (0, 0)),
        ],
        out_specs=pl.BlockSpec((tn, D), lambda i: (i, 0)),
        compiler_params=pltpu.CompilerParams(dimension_semantics=("parallel",)),
    )(x2, g, b, w1, b1, w2, b2)
    return out.reshape(B, S, D)


# ------------------------------ model glue --------------------------------- #

def decoder_layer(x, memory, src_bias, tgt_bias, params, n_heads):
    a = params["attn"]
    # sublayer 0: masked self-attention
    x = self_attn_sublayer(x, tgt_bias, params["ln0_g"], params["ln0_b"],
                           a["wqkv"], a["bqkv"], a["wo"], a["bo"], n_heads)
    # sublayer 1: source attention (reference forward reuses self_attn weights)
    x = cross_attn_sublayer(x, memory, src_bias, params["ln1_g"], params["ln1_b"],
                            a["wq"], a["bq"], a["wkv"], a["bkv"],
                            a["wo"], a["bo"], n_heads)
    # sublayer 2: position-wise feed-forward
    x = ffn_sublayer(x, params["ln2_g"], params["ln2_b"],
                     params["w1"], params["b1"], params["w2"], params["b2"])
    return x


def init_params(key, d_model, d_ff):
    ks = jax.random.split(key, 12)
    w = lambda k, shape: (0.02 * jax.random.normal(k, shape)).astype(jnp.float32)
    bf = jnp.bfloat16
    wq, bq = w(ks[0], (d_model, d_model)), w(ks[1], (1, d_model))
    wk, bk = w(ks[2], (d_model, d_model)), w(ks[3], (1, d_model))
    wv, bv = w(ks[4], (d_model, d_model)), w(ks[5], (1, d_model))
    wo, bo = w(ks[6], (d_model, d_model)), w(ks[7], (1, d_model))
    attn = {
        # fused QKV for self-attention, fused KV for source attention
        "wqkv": jnp.concatenate([wq, wk, wv], axis=1).astype(bf),
        "bqkv": jnp.concatenate([bq, bk, bv], axis=1),
        "wq": wq.astype(bf), "bq": bq,
        "wkv": jnp.concatenate([wk, wv], axis=1).astype(bf),
        "bkv": jnp.concatenate([bk, bv], axis=1),
        "wo": wo.astype(bf), "bo": bo,
    }
    params = {
        "attn": attn,
        # src_attn params exist in the PyTorch module but are unused by its forward.
        "w1": w(ks[8], (d_model, d_ff)).astype(bf), "b1": w(ks[9], (1, d_ff)),
        "w2": w(ks[10], (d_ff, d_model)).astype(bf), "b2": w(ks[11], (1, d_model)),
    }
    for i in range(3):
        params[f"ln{i}_g"] = jnp.ones((1, d_model), jnp.float32)
        params[f"ln{i}_b"] = jnp.zeros((1, d_model), jnp.float32)
    return params


if __name__ == "__main__":
    B, S, S_MEM, D, H, DFF = 2, 8, 8, 32, 4, 64

    key = jax.random.PRNGKey(0)
    kx, km, kp = jax.random.split(key, 3)
    x = jax.random.normal(kx, (B, S, D), jnp.float32)
    memory = jax.random.normal(km, (B, S_MEM, D), jnp.float32)
    params = init_params(kp, D, DFF)

    # Compact additive mask biases (f32, kept f32 inside the kernel):
    #   tgt: per-batch (B, S, S) causal bias; src: per-batch (B, 1, S_mem), all-visible.
    causal = jnp.tril(jnp.ones((S, S), jnp.bool_))
    tgt_bias = jnp.broadcast_to(
        jnp.where(causal, 0.0, -1e9).astype(jnp.float32), (B, S, S))
    tgt_bias = jnp.array(tgt_bias)
    src_bias = jnp.zeros((B, 1, S_MEM), jnp.float32)

    fwd = jax.jit(functools.partial(decoder_layer, n_heads=H))
    out = jax.block_until_ready(fwd(x, memory, src_bias, tgt_bias, params))

    assert out.shape == (B, S, D) and out.dtype == jnp.float32
    assert bool(jnp.all(jnp.isfinite(out)))
    print("KERNEL_OK")
</pallas_src>

<mosaic_0001>
module attributes {stable_mosaic.version = 11 : i64} {
  func.func @ffn_sublayer_kernel(%arg0: i32, %arg1: memref<16x32xf32, #tpu.memory_space<vmem>>, %arg2: memref<1x32xf32, #tpu.memory_space<vmem>>, %arg3: memref<1x32xf32, #tpu.memory_space<vmem>>, %arg4: memref<32x64xbf16, #tpu.memory_space<vmem>>, %arg5: memref<1x64xf32, #tpu.memory_space<vmem>>, %arg6: memref<64x32xbf16, #tpu.memory_space<vmem>>, %arg7: memref<1x32xf32, #tpu.memory_space<vmem>>, %arg8: memref<16x32xf32, #tpu.memory_space<vmem>>) attributes {dimension_semantics = [#tpu.dimension_semantics<parallel>], iteration_bounds = array<i64: 1>, scalar_prefetch = 0 : i64, scratch_operands = 0 : i64, tpu.core_type = #tpu.core_type<tc>, window_params = [{transform_indices = @transform_0, window_bounds = array<i64: 16, 32>}, {pipeline_mode = #tpu.pipeline_mode<synchronous>, transform_indices = @transform_1, window_bounds = array<i64: 1, 32>}, {pipeline_mode = #tpu.pipeline_mode<synchronous>, transform_indices = @transform_2, window_bounds = array<i64: 1, 32>}, {pipeline_mode = #tpu.pipeline_mode<synchronous>, transform_indices = @transform_3, window_bounds = array<i64: 32, 64>}, {pipeline_mode = #tpu.pipeline_mode<synchronous>, transform_indices = @transform_4, window_bounds = array<i64: 1, 64>}, {pipeline_mode = #tpu.pipeline_mode<synchronous>, transform_indices = @transform_5, window_bounds = array<i64: 64, 32>}, {pipeline_mode = #tpu.pipeline_mode<synchronous>, transform_indices = @transform_6, window_bounds = array<i64: 1, 32>}, {transform_indices = @transform_7, window_bounds = array<i64: 16, 32>}]} {
    %c0 = arith.constant 0 : index
    %c0_0 = arith.constant 0 : index
    %0 = vector.load %arg1[%c0, %c0_0] : memref<16x32xf32, #tpu.memory_space<vmem>>, vector<16x32xf32>
    %c0_1 = arith.constant 0 : index
    %c0_2 = arith.constant 0 : index
    %1 = vector.load %arg2[%c0_1, %c0_2] : memref<1x32xf32, #tpu.memory_space<vmem>>, vector<1x32xf32>
    %c0_3 = arith.constant 0 : index
    %c0_4 = arith.constant 0 : index
    %2 = vector.load %arg3[%c0_3, %c0_4] : memref<1x32xf32, #tpu.memory_space<vmem>>, vector<1x32xf32>
    %cst = arith.constant dense<0.000000e+00> : vector<16xf32>
    %3 = vector.multi_reduction <add>, %0, %cst [1] : vector<16x32xf32> to vector<16xf32>
    %4 = vector.shape_cast %3 : vector<16xf32> to vector<16x1xf32>
    %cst_5 = arith.constant 3.200000e+01 : f32
    %5 = vector.broadcast %cst_5 : f32 to vector<16x1xf32>
    %6 = arith.divf %4, %5 : vector<16x1xf32>
    %7 = vector.broadcast %6 : vector<16x1xf32> to vector<16x32xf32>
    %8 = arith.subf %0, %7 : vector<16x32xf32>
    %9 = arith.mulf %8, %8 : vector<16x32xf32>
    %cst_6 = arith.constant dense<0.000000e+00> : vector<16xf32>
    %10 = vector.multi_reduction <add>, %9, %cst_6 [1] : vector<16x32xf32> to vector<16xf32>
    %11 = vector.shape_cast %10 : vector<16xf32> to vector<16x1xf32>
    %cst_7 = arith.constant 3.200000e+01 : f32
    %12 = vector.broadcast %cst_7 : f32 to vector<16x1xf32>
    %13 = arith.divf %11, %12 : vector<16x1xf32>
    %cst_8 = arith.constant 9.99999997E-7 : f32
    %14 = vector.broadcast %cst_8 : f32 to vector<16x1xf32>
    %15 = arith.addf %13, %14 : vector<16x1xf32>
    %16 = math.rsqrt %15 : vector<16x1xf32>
    %17 = vector.broadcast %16 : vector<16x1xf32> to vector<16x32xf32>
    %18 = arith.mulf %8, %17 : vector<16x32xf32>
    %19 = vector.broadcast %1 : vector<1x32xf32> to vector<16x32xf32>
    %20 = arith.mulf %18, %19 : vector<16x32xf32>
    %21 = vector.broadcast %2 : vector<1x32xf32> to vector<16x32xf32>
    %22 = arith.addf %20, %21 : vector<16x32xf32>
    %23 = arith.truncf %22 : vector<16x32xf32> to vector<16x32xbf16>
    %c0_9 = arith.constant 0 : index
    %c0_10 = arith.constant 0 : index
    %24 = vector.load %arg4[%c0_9, %c0_10] : memref<32x64xbf16, #tpu.memory_space<vmem>>, vector<32x64xbf16>
    %cst_11 = arith.constant dense<0.000000e+00> : vector<16x64xf32>
    %25 = tpu.matmul %23, %24, %cst_11 {dimension_numbers = #tpu.dot_dimension_numbers<[1], [0], [0], [1], [0, 0, 1, 1], [], []>} : vector<16x32xbf16>, vector<32x64xbf16>, vector<16x64xf32> -> vector<16x64xf32>
    %c0_12 = arith.constant 0 : index
    %c0_13 = arith.constant 0 : index
    %26 = vector.load %arg5[%c0_12, %c0_13] : memref<1x64xf32, #tpu.memory_space<vmem>>, vector<1x64xf32>
    %27 = vector.broadcast %26 : vector<1x64xf32> to vector<16x64xf32>
    %28 = arith.addf %25, %27 : vector<16x64xf32>
    %cst_14 = arith.constant 0.000000e+00 : f32
    %29 = vector.broadcast %cst_14 : f32 to vector<16x64xf32>
    %30 = arith.maximumf %28, %29 : vector<16x64xf32>
    %31 = arith.truncf %30 : vector<16x64xf32> to vector<16x64xbf16>
    %c0_15 = arith.constant 0 : index
    %c0_16 = arith.constant 0 : index
    %32 = vector.load %arg6[%c0_15, %c0_16] : memref<64x32xbf16, #tpu.memory_space<vmem>>, vector<64x32xbf16>
    %cst_17 = arith.constant dense<0.000000e+00> : vector<16x32xf32>
    %33 = tpu.matmul %31, %32, %cst_17 {dimension_numbers = #tpu.dot_dimension_numbers<[1], [0], [0], [1], [0, 0, 1, 1], [], []>} : vector<16x64xbf16>, vector<64x32xbf16>, vector<16x32xf32> -> vector<16x32xf32>
    %c0_18 = arith.constant 0 : index
    %c0_19 = arith.constant 0 : index
    %34 = vector.load %arg7[%c0_18, %c0_19] : memref<1x32xf32, #tpu.memory_space<vmem>>, vector<1x32xf32>
    %35 = vector.broadcast %34 : vector<1x32xf32> to vector<16x32xf32>
    %36 = arith.addf %33, %35 : vector<16x32xf32>
    %37 = arith.addf %0, %36 : vector<16x32xf32>
    %c0_20 = arith.constant 0 : index
    %c0_21 = arith.constant 0 : index
    %38 = vector.load %arg8[%c0_20, %c0_21] : memref<16x32xf32, #tpu.memory_space<vmem>>, vector<16x32xf32>
    tpu.vector_store %arg8[%c0_20, %c0_21], %37 {strides = array<i32>} : memref<16x32xf32, #tpu.memory_space<vmem>>, vector<16x32xf32>,
    return
  }
  func.func @transform_0(%arg0: i32) -> (i32, i32) {
    %c0_i32 = arith.constant 0 : i32
    %c0_i32_0 = arith.constant 0 : i32
    return %arg0, %c0_i32 : i32, i32
  }
  func.func @transform_1(%arg0: i32) -> (i32, i32) {
    %c0_i32 = arith.constant 0 : i32
    %c0_i32_0 = arith.constant 0 : i32
    %c0_i32_1 = arith.constant 0 : i32
    return %c0_i32, %c0_i32_0 : i32, i32
  }
  func.func @transform_2(%arg0: i32) -> (i32, i32) {
    %c0_i32 = arith.constant 0 : i32
    %c0_i32_0 = arith.constant 0 : i32
    %c0_i32_1 = arith.constant 0 : i32
    return %c0_i32, %c0_i32_0 : i32, i32
  }
  func.func @transform_3(%arg0: i32) -> (i32, i32) {
    %c0_i32 = arith.constant 0 : i32
    %c0_i32_0 = arith.constant 0 : i32
    %c0_i32_1 = arith.constant 0 : i32
    return %c0_i32, %c0_i32_0 : i32, i32
  }
  func.func @transform_4(%arg0: i32) -> (i32, i32) {
    %c0_i32 = arith.constant 0 : i32
    %c0_i32_0 = arith.constant 0 : i32
    %c0_i32_1 = arith.constant 0 : i32
    return %c0_i32, %c0_i32_0 : i32, i32
  }
  func.func @transform_5(%arg0: i32) -> (i32, i32) {
    %c0_i32 = arith.constant 0 : i32
    %c0_i32_0 = arith.constant 0 : i32
    %c0_i32_1 = arith.constant 0 : i32
    return %c0_i32, %c0_i32_0 : i32, i32
  }
  func.func @transform_6(%arg0: i32) -> (i32, i32) {
    %c0_i32 = arith.constant 0 : i32
    %c0_i32_0 = arith.constant 0 : i32
    %c0_i32_1 = arith.constant 0 : i32
    return %c0_i32, %c0_i32_0 : i32, i32
  }
  func.func @transform_7(%arg0: i32) -> (i32, i32) {
    %c0_i32 = arith.constant 0 : i32
    %c0_i32_0 = arith.constant 0 : i32
    return %arg0, %c0_i32 : i32, i32
  }
}

module attributes {stable_mosaic.version = 11 : i64} {
  func.func @cross_attn_sublayer_kernel(%arg0: i32, %arg1: memref<1x8x32xf32, #tpu.memory_space<vmem>>, %arg2: memref<1x8x32xf32, #tpu.memory_space<vmem>>, %arg3: memref<1x1x8xf32, #tpu.memory_space<vmem>>, %arg4: memref<1x32xf32, #tpu.memory_space<vmem>>, %arg5: memref<1x32xf32, #tpu.memory_space<vmem>>, %arg6: memref<32x32xbf16, #tpu.memory_space<vmem>>, %arg7: memref<1x32xf32, #tpu.memory_space<vmem>>, %arg8: memref<32x64xbf16, #tpu.memory_space<vmem>>, %arg9: memref<1x64xf32, #tpu.memory_space<vmem>>, %arg10: memref<32x32xbf16, #tpu.memory_space<vmem>>, %arg11: memref<1x32xf32, #tpu.memory_space<vmem>>, %arg12: memref<1x8x32xf32, #tpu.memory_space<vmem>>) attributes {dimension_semantics = [#tpu.dimension_semantics<parallel>], iteration_bounds = array<i64: 2>, scalar_prefetch = 0 : i64, scratch_operands = 0 : i64, tpu.core_type = #tpu.core_type<tc>, window_params = [{transform_indices = @transform_0, window_bounds = array<i64: 1, 8, 32>}, {transform_indices = @transform_1, window_bounds = array<i64: 1, 8, 32>}, {transform_indices = @transform_2, window_bounds = array<i64: 1, 1, 8>}, {pipeline_mode = #tpu.pipeline_mode<synchronous>, transform_indices = @transform_3, window_bounds = array<i64: 1, 32>}, {pipeline_mode = #tpu.pipeline_mode<synchronous>, transform_indices = @transform_4, window_bounds = array<i64: 1, 32>}, {pipeline_mode = #tpu.pipeline_mode<synchronous>, transform_indices = @transform_5, window_bounds = array<i64: 32, 32>}, {pipeline_mode = #tpu.pipeline_mode<synchronous>, transform_indices = @transform_6, window_bounds = array<i64: 1, 32>}, {pipeline_mode = #tpu.pipeline_mode<synchronous>, transform_indices = @transform_7, window_bounds = array<i64: 32, 64>}, {pipeline_mode = #tpu.pipeline_mode<synchronous>, transform_indices = @transform_8, window_bounds = array<i64: 1, 64>}, {pipeline_mode = #tpu.pipeline_mode<synchronous>, transform_indices = @transform_9, window_bounds = array<i64: 32, 32>}, {pipeline_mode = #tpu.pipeline_mode<synchronous>, transform_indices = @transform_10, window_bounds = array<i64: 1, 32>}, {transform_indices = @transform_11, window_bounds = array<i64: 1, 8, 32>}]} {
    %c0 = arith.constant 0 : index
    %c0_0 = arith.constant 0 : index
    %c0_1 = arith.constant 0 : index
    %0 = vector.load %arg1[%c0, %c0_0, %c0_1] : memref<1x8x32xf32, #tpu.memory_space<vmem>>, vector<1x8x32xf32>
    %1 = vector.shape_cast %0 : vector<1x8x32xf32> to vector<8x32xf32>
    %c0_2 = arith.constant 0 : index
    %c0_3 = arith.constant 0 : index
    %c0_4 = arith.constant 0 : index
    %2 = vector.load %arg2[%c0_2, %c0_3, %c0_4] : memref<1x8x32xf32, #tpu.memory_space<vmem>>, vector<1x8x32xf32>
    %3 = vector.shape_cast %2 : vector<1x8x32xf32> to vector<8x32xf32>
    %c0_5 = arith.constant 0 : index
    %c0_6 = arith.constant 0 : index
    %4 = vector.load %arg4[%c0_5, %c0_6] : memref<1x32xf32, #tpu.memory_space<vmem>>, vector<1x32xf32>
    %c0_7 = arith.constant 0 : index
    %c0_8 = arith.constant 0 : index
    %5 = vector.load %arg5[%c0_7, %c0_8] : memref<1x32xf32, #tpu.memory_space<vmem>>, vector<1x32xf32>
    %cst = arith.constant dense<0.000000e+00> : vector<8xf32>
    %6 = vector.multi_reduction <add>, %1, %cst [1] : vector<8x32xf32> to vector<8xf32>
    %7 = vector.shape_cast %6 : vector<8xf32> to vector<8x1xf32>
    %cst_9 = arith.constant 3.200000e+01 : f32
    %8 = vector.broadcast %cst_9 : f32 to vector<8x1xf32>
    %9 = arith.divf %7, %8 : vector<8x1xf32>
    %10 = vector.broadcast %9 : vector<8x1xf32> to vector<8x32xf32>
    %11 = arith.subf %1, %10 : vector<8x32xf32>
    %12 = arith.mulf %11, %11 : vector<8x32xf32>
    %cst_10 = arith.constant dense<0.000000e+00> : vector<8xf32>
    %13 = vector.multi_reduction <add>, %12, %cst_10 [1] : vector<8x32xf32> to vector<8xf32>
    %14 = vector.shape_cast %13 : vector<8xf32> to vector<8x1xf32>
    %cst_11 = arith.constant 3.200000e+01 : f32
    %15 = vector.broadcast %cst_11 : f32 to vector<8x1xf32>
    %16 = arith.divf %14, %15 : vector<8x1xf32>
    %cst_12 = arith.constant 9.99999997E-7 : f32
    %17 = vector.broadcast %cst_12 : f32 to vector<8x1xf32>
    %18 = arith.addf %16, %17 : vector<8x1xf32>
    %19 = math.rsqrt %18 : vector<8x1xf32>
    %20 = vector.broadcast %19 : vector<8x1xf32> to vector<8x32xf32>
    %21 = arith.mulf %11, %20 : vector<8x32xf32>
    %22 = vector.broadcast %4 : vector<1x32xf32> to vector<8x32xf32>
    %23 = arith.mulf %21, %22 : vector<8x32xf32>
    %24 = vector.broadcast %5 : vector<1x32xf32> to vector<8x32xf32>
    %25 = arith.addf %23, %24 : vector<8x32xf32>
    %26 = arith.truncf %25 : vector<8x32xf32> to vector<8x32xbf16>
    %c0_13 = arith.constant 0 : index
    %c0_14 = arith.constant 0 : index
    %27 = vector.load %arg6[%c0_13, %c0_14] : memref<32x32xbf16, #tpu.memory_space<vmem>>, vector<32x32xbf16>
    %cst_15 = arith.constant dense<0.000000e+00> : vector<8x32xf32>
    %28 = tpu.matmul %26, %27, %cst_15 {dimension_numbers = #tpu.dot_dimension_numbers<[1], [0], [0], [1], [0, 0, 1, 1], [], []>} : vector<8x32xbf16>, vector<32x32xbf16>, vector<8x32xf32> -> vector<8x32xf32>
    %c0_16 = arith.constant 0 : index
    %c0_17 = arith.constant 0 : index
    %29 = vector.load %arg7[%c0_16, %c0_17] : memref<1x32xf32, #tpu.memory_space<vmem>>, vector<1x32xf32>
    %30 = vector.broadcast %29 : vector<1x32xf32> to vector<8x32xf32>
    %31 = arith.addf %28, %30 : vector<8x32xf32>
    %32 = arith.truncf %3 : vector<8x32xf32> to vector<8x32xbf16>
    %c0_18 = arith.constant 0 : index
    %c0_19 = arith.constant 0 : index
    %33 = vector.load %arg8[%c0_18, %c0_19] : memref<32x64xbf16, #tpu.memory_space<vmem>>, vector<32x64xbf16>
    %cst_20 = arith.constant dense<0.000000e+00> : vector<8x64xf32>
    %34 = tpu.matmul %32, %33, %cst_20 {dimension_numbers = #tpu.dot_dimension_numbers<[1], [0], [0], [1], [0, 0, 1, 1], [], []>} : vector<8x32xbf16>, vector<32x64xbf16>, vector<8x64xf32> -> vector<8x64xf32>
    %c0_21 = arith.constant 0 : index
    %c0_22 = arith.constant 0 : index
    %35 = vector.load %arg9[%c0_21, %c0_22] : memref<1x64xf32, #tpu.memory_space<vmem>>, vector<1x64xf32>
    %36 = vector.broadcast %35 : vector<1x64xf32> to vector<8x64xf32>
    %37 = arith.addf %34, %36 : vector<8x64xf32>
    %38 = vector.extract_strided_slice %37 {offsets = [0, 0], sizes = [8, 32], strides = [1, 1]} : vector<8x64xf32> to vector<8x32xf32>
    %39 = vector.extract_strided_slice %37 {offsets = [0, 32], sizes = [8, 32], strides = [1, 1]} : vector<8x64xf32> to vector<8x32xf32>
    %c0_23 = arith.constant 0 : index
    %c0_24 = arith.constant 0 : index
    %c0_25 = arith.constant 0 : index
    %40 = vector.load %arg3[%c0_23, %c0_24, %c0_25] : memref<1x1x8xf32, #tpu.memory_space<vmem>>, vector<1x1x8xf32>
    %41 = vector.shape_cast %40 : vector<1x1x8xf32> to vector<1x8xf32>
    %42 = vector.extract_strided_slice %31 {offsets = [0, 0], sizes = [8, 8], strides = [1, 1]} : vector<8x32xf32> to vector<8x8xf32>
    %cst_26 = arith.constant 0.353553385 : f32
    %43 = vector.broadcast %cst_26 : f32 to vector<8x8xf32>
    %44 = arith.mulf %42, %43 : vector<8x8xf32>
    %45 = vector.extract_strided_slice %38 {offsets = [0, 0], sizes = [8, 8], strides = [1, 1]} : vector<8x32xf32> to vector<8x8xf32>
    %46 = vector.extract_strided_slice %39 {offsets = [0, 0], sizes = [8, 8], strides = [1, 1]} : vector<8x32xf32> to vector<8x8xf32>
    %47 = tpu.transpose %45, [1, 0] : vector<8x8xf32> -> vector<8x8xf32>
    %cst_27 = arith.constant dense<0.000000e+00> : vector<8x8xf32>
    %48 = tpu.matmul %44, %47, %cst_27 {dimension_numbers = #tpu.dot_dimension_numbers<[1], [0], [0], [1], [0, 0, 1, 1], [], []>} : vector<8x8xf32>, vector<8x8xf32>, vector<8x8xf32> -> vector<8x8xf32>
    %49 = vector.broadcast %41 : vector<1x8xf32> to vector<8x8xf32>
    %50 = arith.addf %48, %49 : vector<8x8xf32>
    %cst_28 = arith.constant dense<0xFF800000> : vector<8xf32>
    %51 = vector.multi_reduction <maximumf>, %50, %cst_28 [1] : vector<8x8xf32> to vector<8xf32>
    %52 = vector.shape_cast %51 : vector<8xf32> to vector<8x1xf32>
    %53 = vector.broadcast %52 : vector<8x1xf32> to vector<8x8xf32>
    %54 = arith.subf %50, %53 : vector<8x8xf32>
    %55 = math.exp %54 : vector<8x8xf32>
    %cst_29 = arith.constant dense<0.000000e+00> : vector<8xf32>
    %56 = vector.multi_reduction <add>, %55, %cst_29 [1] : vector<8x8xf32> to vector<8xf32>
    %57 = vector.shape_cast %56 : vector<8xf32> to vector<8x1xf32>
    %58 = tpu.reciprocal %57 {approx = true} : vector<8x1xf32> -> vector<8x1xf32>
    %59 = vector.broadcast %58 : vector<8x1xf32> to vector<8x8xf32>
    %60 = arith.mulf %55, %59 : vector<8x8xf32>
    %cst_30 = arith.constant dense<0.000000e+00> : vector<8x8xf32>
    %61 = tpu.matmul %60, %46, %cst_30 {dimension_numbers = #tpu.dot_dimension_numbers<[1], [0], [0], [1], [0, 0, 1, 1], [], []>} : vector<8x8xf32>, vector<8x8xf32>, vector<8x8xf32> -> vector<8x8xf32>
    %62 = vector.extract_strided_slice %31 {offsets = [0, 8], sizes = [8, 8], strides = [1, 1]} : vector<8x32xf32> to vector<8x8xf32>
    %cst_31 = arith.constant 0.353553385 : f32
    %63 = vector.broadcast %cst_31 : f32 to vector<8x8xf32>
    %64 = arith.mulf %62, %63 : vector<8x8xf32>
    %65 = vector.extract_strided_slice %38 {offsets = [0, 8], sizes = [8, 8], strides = [1, 1]} : vector<8x32xf32> to vector<8x8xf32>
    %66 = vector.extract_strided_slice %39 {offsets = [0, 8], sizes = [8, 8], strides = [1, 1]} : vector<8x32xf32> to vector<8x8xf32>
    %67 = tpu.transpose %65, [1, 0] : vector<8x8xf32> -> vector<8x8xf32>
    %cst_32 = arith.constant dense<0.000000e+00> : vector<8x8xf32>
    %68 = tpu.matmul %64, %67, %cst_32 {dimension_numbers = #tpu.dot_dimension_numbers<[1], [0], [0], [1], [0, 0, 1, 1], [], []>} : vector<8x8xf32>, vector<8x8xf32>, vector<8x8xf32> -> vector<8x8xf32>
    %69 = vector.broadcast %41 : vector<1x8xf32> to vector<8x8xf32>
    %70 = arith.addf %68, %69 : vector<8x8xf32>
    %cst_33 = arith.constant dense<0xFF800000> : vector<8xf32>
    %71 = vector.multi_reduction <maximumf>, %70, %cst_33 [1] : vector<8x8xf32> to vector<8xf32>
    %72 = vector.shape_cast %71 : vector<8xf32> to vector<8x1xf32>
    %73 = vector.broadcast %72 : vector<8x1xf32> to vector<8x8xf32>
    %74 = arith.subf %70, %73 : vector<8x8xf32>
    %75 = math.exp %74 : vector<8x8xf32>
    %cst_34 = arith.constant dense<0.000000e+00> : vector<8xf32>
    %76 = vector.multi_reduction <add>, %75, %cst_34 [1] : vector<8x8xf32> to vector<8xf32>
    %77 = vector.shape_cast %76 : vector<8xf32> to vector<8x1xf32>
    %78 = tpu.reciprocal %77 {approx = true} : vector<8x1xf32> -> vector<8x1xf32>
    %79 = vector.broadcast %78 : vector<8x1xf32> to vector<8x8xf32>
    %80 = arith.mulf %75, %79 : vector<8x8xf32>
    %cst_35 = arith.constant dense<0.000000e+00> : vector<8x8xf32>
    %81 = tpu.matmul %80, %66, %cst_35 {dimension_numbers = #tpu.dot_dimension_numbers<[1], [0], [0], [1], [0, 0, 1, 1], [], []>} : vector<8x8xf32>, vector<8x8xf32>, vector<8x8xf32> -> vector<8x8xf32>
    %82 = vector.extract_strided_slice %31 {offsets = [0, 16], sizes = [8, 8], strides = [1, 1]} : vector<8x32xf32> to vector<8x8xf32>
    %cst_36 = arith.constant 0.353553385 : f32
    %83 = vector.broadcast %cst_36 : f32 to vector<8x8xf32>
    %84 = arith.mulf %82, %83 : vector<8x8xf32>
    %85 = vector.extract_strided_slice %38 {offsets = [0, 16], sizes = [8, 8], strides = [1, 1]} : vector<8x32xf32> to vector<8x8xf32>
    %86 = vector.extract_strided_slice %39 {offsets = [0, 16], sizes = [8, 8], strides = [1, 1]} : vector<8x32xf32> to vector<8x8xf32>
    %87 = tpu.transpose %85, [1, 0] : vector<8x8xf32> -> vector<8x8xf32>
    %cst_37 = arith.constant dense<0.000000e+00> : vector<8x8xf32>
    %88 = tpu.matmul %84, %87, %cst_37 {dimension_numbers = #tpu.dot_dimension_numbers<[1], [0], [0], [1], [0, 0, 1, 1], [], []>} : vector<8x8xf32>, vector<8x8xf32>, vector<8x8xf32> -> vector<8x8xf32>
    %89 = vector.broadcast %41 : vector<1x8xf32> to vector<8x8xf32>
    %90 = arith.addf %88, %89 : vector<8x8xf32>
    %cst_38 = arith.constant dense<0xFF800000> : vector<8xf32>
    %91 = vector.multi_reduction <maximumf>, %90, %cst_38 [1] : vector<8x8xf32> to vector<8xf32>
    %92 = vector.shape_cast %91 : vector<8xf32> to vector<8x1xf32>
    %93 = vector.broadcast %92 : vector<8x1xf32> to vector<8x8xf32>
    %94 = arith.subf %90, %93 : vector<8x8xf32>
    %95 = math.exp %94 : vector<8x8xf32>
    %cst_39 = arith.constant dense<0.000000e+00> : vector<8xf32>
    %96 = vector.multi_reduction <add>, %95, %cst_39 [1] : vector<8x8xf32> to vector<8xf32>
    %97 = vector.shape_cast %96 : vector<8xf32> to vector<8x1xf32>
    %98 = tpu.reciprocal %97 {approx = true} : vector<8x1xf32> -> vector<8x1xf32>
    %99 = vector.broadcast %98 : vector<8x1xf32> to vector<8x8xf32>
    %100 = arith.mulf %95, %99 : vector<8x8xf32>
    %cst_40 = arith.constant dense<0.000000e+00> : vector<8x8xf32>
    %101 = tpu.matmul %100, %86, %cst_40 {dimension_numbers = #tpu.dot_dimension_numbers<[1], [0], [0], [1], [0, 0, 1, 1], [], []>} : vector<8x8xf32>, vector<8x8xf32>, vector<8x8xf32> -> vector<8x8xf32>
    %102 = vector.extract_strided_slice %31 {offsets = [0, 24], sizes = [8, 8], strides = [1, 1]} : vector<8x32xf32> to vector<8x8xf32>
    %cst_41 = arith.constant 0.353553385 : f32
    %103 = vector.broadcast %cst_41 : f32 to vector<8x8xf32>
    %104 = arith.mulf %102, %103 : vector<8x8xf32>
    %105 = vector.extract_strided_slice %38 {offsets = [0, 24], sizes = [8, 8], strides = [1, 1]} : vector<8x32xf32> to vector<8x8xf32>
    %106 = vector.extract_strided_slice %39 {offsets = [0, 24], sizes = [8, 8], strides = [1, 1]} : vector<8x32xf32> to vector<8x8xf32>
    %107 = tpu.transpose %105, [1, 0] : vector<8x8xf32> -> vector<8x8xf32>
    %cst_42 = arith.constant dense<0.000000e+00> : vector<8x8xf32>
    %108 = tpu.matmul %104, %107, %cst_42 {dimension_numbers = #tpu.dot_dimension_numbers<[1], [0], [0], [1], [0, 0, 1, 1], [], []>} : vector<8x8xf32>, vector<8x8xf32>, vector<8x8xf32> -> vector<8x8xf32>
    %109 = vector.broadcast %41 : vector<1x8xf32> to vector<8x8xf32>
    %110 = arith.addf %108, %109 : vector<8x8xf32>
    %cst_43 = arith.constant dense<0xFF800000> : vector<8xf32>
    %111 = vector.multi_reduction <maximumf>, %110, %cst_43 [1] : vector<8x8xf32> to vector<8xf32>
    %112 = vector.shape_cast %111 : vector<8xf32> to vector<8x1xf32>
    %113 = vector.broadcast %112 : vector<8x1xf32> to vector<8x8xf32>
    %114 = arith.subf %110, %113 : vector<8x8xf32>
    %115 = math.exp %114 : vector<8x8xf32>
    %cst_44 = arith.constant dense<0.000000e+00> : vector<8xf32>
    %116 = vector.multi_reduction <add>, %115, %cst_44 [1] : vector<8x8xf32> to vector<8xf32>
    %117 = vector.shape_cast %116 : vector<8xf32> to vector<8x1xf32>
    %118 = tpu.reciprocal %117 {approx = true} : vector<8x1xf32> -> vector<8x1xf32>
    %119 = vector.broadcast %118 : vector<8x1xf32> to vector<8x8xf32>
    %120 = arith.mulf %115, %119 : vector<8x8xf32>
    %cst_45 = arith.constant dense<0.000000e+00> : vector<8x8xf32>
    %121 = tpu.matmul %120, %106, %cst_45 {dimension_numbers = #tpu.dot_dimension_numbers<[1], [0], [0], [1], [0, 0, 1, 1], [], []>} : vector<8x8xf32>, vector<8x8xf32>, vector<8x8xf32> -> vector<8x8xf32>
    %122 = tpu.concatenate %61, %81, %101, %121 in 1 : vector<8x8xf32>, vector<8x8xf32>, vector<8x8xf32>, vector<8x8xf32> -> vector<8x32xf32>
    %123 = arith.truncf %122 : vector<8x32xf32> to vector<8x32xbf16>
    %c0_46 = arith.constant 0 : index
    %c0_47 = arith.constant 0 : index
    %124 = vector.load %arg10[%c0_46, %c0_47] : memref<32x32xbf16, #tpu.memory_space<vmem>>, vector<32x32xbf16>
    %cst_48 = arith.constant dense<0.000000e+00> : vector<8x32xf32>
    %125 = tpu.matmul %123, %124, %cst_48 {dimension_numbers = #tpu.dot_dimension_numbers<[1], [0], [0], [1], [0, 0, 1, 1], [], []>} : vector<8x32xbf16>, vector<32x32xbf16>, vector<8x32xf32> -> vector<8x32xf32>
    %c0_49 = arith.constant 0 : index
    %c0_50 = arith.constant 0 : index
    %126 = vector.load %arg11[%c0_49, %c0_50] : memref<1x32xf32, #tpu.memory_space<vmem>>, vector<1x32xf32>
    %127 = vector.broadcast %126 : vector<1x32xf32> to vector<8x32xf32>
    %128 = arith.addf %125, %127 : vector<8x32xf32>
    %129 = arith.addf %1, %128 : vector<8x32xf32>
    %c0_51 = arith.constant 0 : index
    %c0_52 = arith.constant 0 : index
    %c0_53 = arith.constant 0 : index
    %130 = vector.load %arg12[%c0_51, %c0_52, %c0_53] : memref<1x8x32xf32, #tpu.memory_space<vmem>>, vector<1x8x32xf32>
    %131 = vector.shape_cast %130 : vector<1x8x32xf32> to vector<8x32xf32>
    %132 = vector.shape_cast %129 : vector<8x32xf32> to vector<1x8x32xf32>
    tpu.vector_store %arg12[%c0_51, %c0_52, %c0_53], %132 {strides = array<i32>} : memref<1x8x32xf32, #tpu.memory_space<vmem>>, vector<1x8x32xf32>,
    return
  }
  func.func @transform_0(%arg0: i32) -> (i32, i32, i32) {
    %c0_i32 = arith.constant 0 : i32
    %c0_i32_0 = arith.constant 0 : i32
    %c0_i32_1 = arith.constant 0 : i32
    return %arg0, %c0_i32, %c0_i32_0 : i32, i32, i32
  }
  func.func @transform_1(%arg0: i32) -> (i32, i32, i32) {
    %c0_i32 = arith.constant 0 : i32
    %c0_i32_0 = arith.constant 0 : i32
    %c0_i32_1 = arith.constant 0 : i32
    return %arg0, %c0_i32, %c0_i32_0 : i32, i32, i32
  }
  func.func @transform_2(%arg0: i32) -> (i32, i32, i32) {
    %c0_i32 = arith.constant 0 : i32
    %c0_i32_0 = arith.constant 0 : i32
    %c0_i32_1 = arith.constant 0 : i32
    return %arg0, %c0_i32, %c0_i32_0 : i32, i32, i32
  }
  func.func @transform_3(%arg0: i32) -> (i32, i32) {
    %c0_i32 = arith.constant 0 : i32
    %c0_i32_0 = arith.constant 0 : i32
    %c0_i32_1 = arith.constant 0 : i32
    return %c0_i32, %c0_i32_0 : i32, i32
  }
  func.func @transform_4(%arg0: i32) -> (i32, i32) {
    %c0_i32 = arith.constant 0 : i32
    %c0_i32_0 = arith.constant 0 : i32
    %c0_i32_1 = arith.constant 0 : i32
    return %c0_i32, %c0_i32_0 : i32, i32
  }
  func.func @transform_5(%arg0: i32) -> (i32, i32) {
    %c0_i32 = arith.constant 0 : i32
    %c0_i32_0 = arith.constant 0 : i32
    %c0_i32_1 = arith.constant 0 : i32
    return %c0_i32, %c0_i32_0 : i32, i32
  }
  func.func @transform_6(%arg0: i32) -> (i32, i32) {
    %c0_i32 = arith.constant 0 : i32
    %c0_i32_0 = arith.constant 0 : i32
    %c0_i32_1 = arith.constant 0 : i32
    return %c0_i32, %c0_i32_0 : i32, i32
  }
  func.func @transform_7(%arg0: i32) -> (i32, i32) {
    %c0_i32 = arith.constant 0 : i32
    %c0_i32_0 = arith.constant 0 : i32
    %c0_i32_1 = arith.constant 0 : i32
    return %c0_i32, %c0_i32_0 : i32, i32
  }
  func.func @transform_8(%arg0: i32) -> (i32, i32) {
    %c0_i32 = arith.constant 0 : i32
    %c0_i32_0 = arith.constant 0 : i32
    %c0_i32_1 = arith.constant 0 : i32
    return %c0_i32, %c0_i32_0 : i32, i32
  }
  func.func @transform_9(%arg0: i32) -> (i32, i32) {
    %c0_i32 = arith.constant 0 : i32
    %c0_i32_0 = arith.constant 0 : i32
    %c0_i32_1 = arith.constant 0 : i32
    return %c0_i32, %c0_i32_0 : i32, i32
  }
  func.func @transform_10(%arg0: i32) -> (i32, i32) {
    %c0_i32 = arith.constant 0 : i32
    %c0_i32_0 = arith.constant 0 : i32
    %c0_i32_1 = arith.constant 0 : i32
    return %c0_i32, %c0_i32_0 : i32, i32
  }
  func.func @transform_11(%arg0: i32) -> (i32, i32, i32) {
    %c0_i32 = arith.constant 0 : i32
    %c0_i32_0 = arith.constant 0 : i32
    %c0_i32_1 = arith.constant 0 : i32
    return %arg0, %c0_i32, %c0_i32_0 : i32, i32, i32
  }
}

module attributes {stable_mosaic.version = 11 : i64} {
  func.func @self_attn_sublayer_kernel(%arg0: i32, %arg1: memref<1x8x32xf32, #tpu.memory_space<vmem>>, %arg2: memref<1x8x8xf32, #tpu.memory_space<vmem>>, %arg3: memref<1x32xf32, #tpu.memory_space<vmem>>, %arg4: memref<1x32xf32, #tpu.memory_space<vmem>>, %arg5: memref<32x96xbf16, #tpu.memory_space<vmem>>, %arg6: memref<1x96xf32, #tpu.memory_space<vmem>>, %arg7: memref<32x32xbf16, #tpu.memory_space<vmem>>, %arg8: memref<1x32xf32, #tpu.memory_space<vmem>>, %arg9: memref<1x8x32xf32, #tpu.memory_space<vmem>>) attributes {dimension_semantics = [#tpu.dimension_semantics<parallel>], iteration_bounds = array<i64: 2>, scalar_prefetch = 0 : i64, scratch_operands = 0 : i64, tpu.core_type = #tpu.core_type<tc>, window_params = [{transform_indices = @transform_0, window_bounds = array<i64: 1, 8, 32>}, {transform_indices = @transform_1, window_bounds = array<i64: 1, 8, 8>}, {pipeline_mode = #tpu.pipeline_mode<synchronous>, transform_indices = @transform_2, window_bounds = array<i64: 1, 32>}, {pipeline_mode = #tpu.pipeline_mode<synchronous>, transform_indices = @transform_3, window_bounds = array<i64: 1, 32>}, {pipeline_mode = #tpu.pipeline_mode<synchronous>, transform_indices = @transform_4, window_bounds = array<i64: 32, 96>}, {pipeline_mode = #tpu.pipeline_mode<synchronous>, transform_indices = @transform_5, window_bounds = array<i64: 1, 96>}, {pipeline_mode = #tpu.pipeline_mode<synchronous>, transform_indices = @transform_6, window_bounds = array<i64: 32, 32>}, {pipeline_mode = #tpu.pipeline_mode<synchronous>, transform_indices = @transform_7, window_bounds = array<i64: 1, 32>}, {transform_indices = @transform_8, window_bounds = array<i64: 1, 8, 32>}]} {
    %c0 = arith.constant 0 : index
    %c0_0 = arith.constant 0 : index
    %c0_1 = arith.constant 0 : index
    %0 = vector.load %arg1[%c0, %c0_0, %c0_1] : memref<1x8x32xf32, #tpu.memory_space<vmem>>, vector<1x8x32xf32>
    %1 = vector.shape_cast %0 : vector<1x8x32xf32> to vector<8x32xf32>
    %c0_2 = arith.constant 0 : index
    %c0_3 = arith.constant 0 : index
    %2 = vector.load %arg3[%c0_2, %c0_3] : memref<1x32xf32, #tpu.memory_space<vmem>>, vector<1x32xf32>
    %c0_4 = arith.constant 0 : index
    %c0_5 = arith.constant 0 : index
    %3 = vector.load %arg4[%c0_4, %c0_5] : memref<1x32xf32, #tpu.memory_space<vmem>>, vector<1x32xf32>
    %cst = arith.constant dense<0.000000e+00> : vector<8xf32>
    %4 = vector.multi_reduction <add>, %1, %cst [1] : vector<8x32xf32> to vector<8xf32>
    %5 = vector.shape_cast %4 : vector<8xf32> to vector<8x1xf32>
    %cst_6 = arith.constant 3.200000e+01 : f32
    %6 = vector.broadcast %cst_6 : f32 to vector<8x1xf32>
    %7 = arith.divf %5, %6 : vector<8x1xf32>
    %8 = vector.broadcast %7 : vector<8x1xf32> to vector<8x32xf32>
    %9 = arith.subf %1, %8 : vector<8x32xf32>
    %10 = arith.mulf %9, %9 : vector<8x32xf32>
    %cst_7 = arith.constant dense<0.000000e+00> : vector<8xf32>
    %11 = vector.multi_reduction <add>, %10, %cst_7 [1] : vector<8x32xf32> to vector<8xf32>
    %12 = vector.shape_cast %11 : vector<8xf32> to vector<8x1xf32>
    %cst_8 = arith.constant 3.200000e+01 : f32
    %13 = vector.broadcast %cst_8 : f32 to vector<8x1xf32>
    %14 = arith.divf %12, %13 : vector<8x1xf32>
    %cst_9 = arith.constant 9.99999997E-7 : f32
    %15 = vector.broadcast %cst_9 : f32 to vector<8x1xf32>
    %16 = arith.addf %14, %15 : vector<8x1xf32>
    %17 = math.rsqrt %16 : vector<8x1xf32>
    %18 = vector.broadcast %17 : vector<8x1xf32> to vector<8x32xf32>
    %19 = arith.mulf %9, %18 : vector<8x32xf32>
    %20 = vector.broadcast %2 : vector<1x32xf32> to vector<8x32xf32>
    %21 = arith.mulf %19, %20 : vector<8x32xf32>
    %22 = vector.broadcast %3 : vector<1x32xf32> to vector<8x32xf32>
    %23 = arith.addf %21, %22 : vector<8x32xf32>
    %24 = arith.truncf %23 : vector<8x32xf32> to vector<8x32xbf16>
    %c0_10 = arith.constant 0 : index
    %c0_11 = arith.constant 0 : index
    %25 = vector.load %arg5[%c0_10, %c0_11] : memref<32x96xbf16, #tpu.memory_space<vmem>>, vector<32x96xbf16>
    %cst_12 = arith.constant dense<0.000000e+00> : vector<8x96xf32>
    %26 = tpu.matmul %24, %25, %cst_12 {dimension_numbers = #tpu.dot_dimension_numbers<[1], [0], [0], [1], [0, 0, 1, 1], [], []>} : vector<8x32xbf16>, vector<32x96xbf16>, vector<8x96xf32> -> vector<8x96xf32>
    %c0_13 = arith.constant 0 : index
    %c0_14 = arith.constant 0 : index
    %27 = vector.load %arg6[%c0_13, %c0_14] : memref<1x96xf32, #tpu.memory_space<vmem>>, vector<1x96xf32>
    %28 = vector.broadcast %27 : vector<1x96xf32> to vector<8x96xf32>
    %29 = arith.addf %26, %28 : vector<8x96xf32>
    %30 = vector.extract_strided_slice %29 {offsets = [0, 0], sizes = [8, 32], strides = [1, 1]} : vector<8x96xf32> to vector<8x32xf32>
    %31 = vector.extract_strided_slice %29 {offsets = [0, 32], sizes = [8, 32], strides = [1, 1]} : vector<8x96xf32> to vector<8x32xf32>
    %32 = vector.extract_strided_slice %29 {offsets = [0, 64], sizes = [8, 32], strides = [1, 1]} : vector<8x96xf32> to vector<8x32xf32>
    %c0_15 = arith.constant 0 : index
    %c0_16 = arith.constant 0 : index
    %c0_17 = arith.constant 0 : index
    %33 = vector.load %arg2[%c0_15, %c0_16, %c0_17] : memref<1x8x8xf32, #tpu.memory_space<vmem>>, vector<1x8x8xf32>
    %34 = vector.shape_cast %33 : vector<1x8x8xf32> to vector<8x8xf32>
    %35 = vector.extract_strided_slice %30 {offsets = [0, 0], sizes = [8, 8], strides = [1, 1]} : vector<8x32xf32> to vector<8x8xf32>
    %cst_18 = arith.constant 0.353553385 : f32
    %36 = vector.broadcast %cst_18 : f32 to vector<8x8xf32>
    %37 = arith.mulf %35, %36 : vector<8x8xf32>
    %38 = vector.extract_strided_slice %31 {offsets = [0, 0], sizes = [8, 8], strides = [1, 1]} : vector<8x32xf32> to vector<8x8xf32>
    %39 = vector.extract_strided_slice %32 {offsets = [0, 0], sizes = [8, 8], strides = [1, 1]} : vector<8x32xf32> to vector<8x8xf32>
    %40 = tpu.transpose %38, [1, 0] : vector<8x8xf32> -> vector<8x8xf32>
    %cst_19 = arith.constant dense<0.000000e+00> : vector<8x8xf32>
    %41 = tpu.matmul %37, %40, %cst_19 {dimension_numbers = #tpu.dot_dimension_numbers<[1], [0], [0], [1], [0, 0, 1, 1], [], []>} : vector<8x8xf32>, vector<8x8xf32>, vector<8x8xf32> -> vector<8x8xf32>
    %42 = arith.addf %41, %34 : vector<8x8xf32>
    %cst_20 = arith.constant dense<0xFF800000> : vector<8xf32>
    %43 = vector.multi_reduction <maximumf>, %42, %cst_20 [1] : vector<8x8xf32> to vector<8xf32>
    %44 = vector.shape_cast %43 : vector<8xf32> to vector<8x1xf32>
    %45 = vector.broadcast %44 : vector<8x1xf32> to vector<8x8xf32>
    %46 = arith.subf %42, %45 : vector<8x8xf32>
    %47 = math.exp %46 : vector<8x8xf32>
    %cst_21 = arith.constant dense<0.000000e+00> : vector<8xf32>
    %48 = vector.multi_reduction <add>, %47, %cst_21 [1] : vector<8x8xf32> to vector<8xf32>
    %49 = vector.shape_cast %48 : vector<8xf32> to vector<8x1xf32>
    %50 = tpu.reciprocal %49 {approx = true} : vector<8x1xf32> -> vector<8x1xf32>
    %51 = vector.broadcast %50 : vector<8x1xf32> to vector<8x8xf32>
    %52 = arith.mulf %47, %51 : vector<8x8xf32>
    %cst_22 = arith.constant dense<0.000000e+00> : vector<8x8xf32>
    %53 = tpu.matmul %52, %39, %cst_22 {dimension_numbers = #tpu.dot_dimension_numbers<[1], [0], [0], [1], [0, 0, 1, 1], [], []>} : vector<8x8xf32>, vector<8x8xf32>, vector<8x8xf32> -> vector<8x8xf32>
    %54 = vector.extract_strided_slice %30 {offsets = [0, 8], sizes = [8, 8], strides = [1, 1]} : vector<8x32xf32> to vector<8x8xf32>
    %cst_23 = arith.constant 0.353553385 : f32
    %55 = vector.broadcast %cst_23 : f32 to vector<8x8xf32>
    %56 = arith.mulf %54, %55 : vector<8x8xf32>
    %57 = vector.extract_strided_slice %31 {offsets = [0, 8], sizes = [8, 8], strides = [1, 1]} : vector<8x32xf32> to vector<8x8xf32>
    %58 = vector.extract_strided_slice %32 {offsets = [0, 8], sizes = [8, 8], strides = [1, 1]} : vector<8x32xf32> to vector<8x8xf32>
    %59 = tpu.transpose %57, [1, 0] : vector<8x8xf32> -> vector<8x8xf32>
    %cst_24 = arith.constant dense<0.000000e+00> : vector<8x8xf32>
    %60 = tpu.matmul %56, %59, %cst_24 {dimension_numbers = #tpu.dot_dimension_numbers<[1], [0], [0], [1], [0, 0, 1, 1], [], []>} : vector<8x8xf32>, vector<8x8xf32>, vector<8x8xf32> -> vector<8x8xf32>
    %61 = arith.addf %60, %34 : vector<8x8xf32>
    %cst_25 = arith.constant dense<0xFF800000> : vector<8xf32>
    %62 = vector.multi_reduction <maximumf>, %61, %cst_25 [1] : vector<8x8xf32> to vector<8xf32>
    %63 = vector.shape_cast %62 : vector<8xf32> to vector<8x1xf32>
    %64 = vector.broadcast %63 : vector<8x1xf32> to vector<8x8xf32>
    %65 = arith.subf %61, %64 : vector<8x8xf32>
    %66 = math.exp %65 : vector<8x8xf32>
    %cst_26 = arith.constant dense<0.000000e+00> : vector<8xf32>
    %67 = vector.multi_reduction <add>, %66, %cst_26 [1] : vector<8x8xf32> to vector<8xf32>
    %68 = vector.shape_cast %67 : vector<8xf32> to vector<8x1xf32>
    %69 = tpu.reciprocal %68 {approx = true} : vector<8x1xf32> -> vector<8x1xf32>
    %70 = vector.broadcast %69 : vector<8x1xf32> to vector<8x8xf32>
    %71 = arith.mulf %66, %70 : vector<8x8xf32>
    %cst_27 = arith.constant dense<0.000000e+00> : vector<8x8xf32>
    %72 = tpu.matmul %71, %58, %cst_27 {dimension_numbers = #tpu.dot_dimension_numbers<[1], [0], [0], [1], [0, 0, 1, 1], [], []>} : vector<8x8xf32>, vector<8x8xf32>, vector<8x8xf32> -> vector<8x8xf32>
    %73 = vector.extract_strided_slice %30 {offsets = [0, 16], sizes = [8, 8], strides = [1, 1]} : vector<8x32xf32> to vector<8x8xf32>
    %cst_28 = arith.constant 0.353553385 : f32
    %74 = vector.broadcast %cst_28 : f32 to vector<8x8xf32>
    %75 = arith.mulf %73, %74 : vector<8x8xf32>
    %76 = vector.extract_strided_slice %31 {offsets = [0, 16], sizes = [8, 8], strides = [1, 1]} : vector<8x32xf32> to vector<8x8xf32>
    %77 = vector.extract_strided_slice %32 {offsets = [0, 16], sizes = [8, 8], strides = [1, 1]} : vector<8x32xf32> to vector<8x8xf32>
    %78 = tpu.transpose %76, [1, 0] : vector<8x8xf32> -> vector<8x8xf32>
    %cst_29 = arith.constant dense<0.000000e+00> : vector<8x8xf32>
    %79 = tpu.matmul %75, %78, %cst_29 {dimension_numbers = #tpu.dot_dimension_numbers<[1], [0], [0], [1], [0, 0, 1, 1], [], []>} : vector<8x8xf32>, vector<8x8xf32>, vector<8x8xf32> -> vector<8x8xf32>
    %80 = arith.addf %79, %34 : vector<8x8xf32>
    %cst_30 = arith.constant dense<0xFF800000> : vector<8xf32>
    %81 = vector.multi_reduction <maximumf>, %80, %cst_30 [1] : vector<8x8xf32> to vector<8xf32>
    %82 = vector.shape_cast %81 : vector<8xf32> to vector<8x1xf32>
    %83 = vector.broadcast %82 : vector<8x1xf32> to vector<8x8xf32>
    %84 = arith.subf %80, %83 : vector<8x8xf32>
    %85 = math.exp %84 : vector<8x8xf32>
    %cst_31 = arith.constant dense<0.000000e+00> : vector<8xf32>
    %86 = vector.multi_reduction <add>, %85, %cst_31 [1] : vector<8x8xf32> to vector<8xf32>
    %87 = vector.shape_cast %86 : vector<8xf32> to vector<8x1xf32>
    %88 = tpu.reciprocal %87 {approx = true} : vector<8x1xf32> -> vector<8x1xf32>
    %89 = vector.broadcast %88 : vector<8x1xf32> to vector<8x8xf32>
    %90 = arith.mulf %85, %89 : vector<8x8xf32>
    %cst_32 = arith.constant dense<0.000000e+00> : vector<8x8xf32>
    %91 = tpu.matmul %90, %77, %cst_32 {dimension_numbers = #tpu.dot_dimension_numbers<[1], [0], [0], [1], [0, 0, 1, 1], [], []>} : vector<8x8xf32>, vector<8x8xf32>, vector<8x8xf32> -> vector<8x8xf32>
    %92 = vector.extract_strided_slice %30 {offsets = [0, 24], sizes = [8, 8], strides = [1, 1]} : vector<8x32xf32> to vector<8x8xf32>
    %cst_33 = arith.constant 0.353553385 : f32
    %93 = vector.broadcast %cst_33 : f32 to vector<8x8xf32>
    %94 = arith.mulf %92, %93 : vector<8x8xf32>
    %95 = vector.extract_strided_slice %31 {offsets = [0, 24], sizes = [8, 8], strides = [1, 1]} : vector<8x32xf32> to vector<8x8xf32>
    %96 = vector.extract_strided_slice %32 {offsets = [0, 24], sizes = [8, 8], strides = [1, 1]} : vector<8x32xf32> to vector<8x8xf32>
    %97 = tpu.transpose %95, [1, 0] : vector<8x8xf32> -> vector<8x8xf32>
    %cst_34 = arith.constant dense<0.000000e+00> : vector<8x8xf32>
    %98 = tpu.matmul %94, %97, %cst_34 {dimension_numbers = #tpu.dot_dimension_numbers<[1], [0], [0], [1], [0, 0, 1, 1], [], []>} : vector<8x8xf32>, vector<8x8xf32>, vector<8x8xf32> -> vector<8x8xf32>
    %99 = arith.addf %98, %34 : vector<8x8xf32>
    %cst_35 = arith.constant dense<0xFF800000> : vector<8xf32>
    %100 = vector.multi_reduction <maximumf>, %99, %cst_35 [1] : vector<8x8xf32> to vector<8xf32>
    %101 = vector.shape_cast %100 : vector<8xf32> to vector<8x1xf32>
    %102 = vector.broadcast %101 : vector<8x1xf32> to vector<8x8xf32>
    %103 = arith.subf %99, %102 : vector<8x8xf32>
    %104 = math.exp %103 : vector<8x8xf32>
    %cst_36 = arith.constant dense<0.000000e+00> : vector<8xf32>
    %105 = vector.multi_reduction <add>, %104, %cst_36 [1] : vector<8x8xf32> to vector<8xf32>
    %106 = vector.shape_cast %105 : vector<8xf32> to vector<8x1xf32>
    %107 = tpu.reciprocal %106 {approx = true} : vector<8x1xf32> -> vector<8x1xf32>
    %108 = vector.broadcast %107 : vector<8x1xf32> to vector<8x8xf32>
    %109 = arith.mulf %104, %108 : vector<8x8xf32>
    %cst_37 = arith.constant dense<0.000000e+00> : vector<8x8xf32>
    %110 = tpu.matmul %109, %96, %cst_37 {dimension_numbers = #tpu.dot_dimension_numbers<[1], [0], [0], [1], [0, 0, 1, 1], [], []>} : vector<8x8xf32>, vector<8x8xf32>, vector<8x8xf32> -> vector<8x8xf32>
    %111 = tpu.concatenate %53, %72, %91, %110 in 1 : vector<8x8xf32>, vector<8x8xf32>, vector<8x8xf32>, vector<8x8xf32> -> vector<8x32xf32>
    %112 = arith.truncf %111 : vector<8x32xf32> to vector<8x32xbf16>
    %c0_38 = arith.constant 0 : index
    %c0_39 = arith.constant 0 : index
    %113 = vector.load %arg7[%c0_38, %c0_39] : memref<32x32xbf16, #tpu.memory_space<vmem>>, vector<32x32xbf16>
    %cst_40 = arith.constant dense<0.000000e+00> : vector<8x32xf32>
    %114 = tpu.matmul %112, %113, %cst_40 {dimension_numbers = #tpu.dot_dimension_numbers<[1], [0], [0], [1], [0, 0, 1, 1], [], []>} : vector<8x32xbf16>, vector<32x32xbf16>, vector<8x32xf32> -> vector<8x32xf32>
    %c0_41 = arith.constant 0 : index
    %c0_42 = arith.constant 0 : index
    %115 = vector.load %arg8[%c0_41, %c0_42] : memref<1x32xf32, #tpu.memory_space<vmem>>, vector<1x32xf32>
    %116 = vector.broadcast %115 : vector<1x32xf32> to vector<8x32xf32>
    %117 = arith.addf %114, %116 : vector<8x32xf32>
    %118 = arith.addf %1, %117 : vector<8x32xf32>
    %c0_43 = arith.constant 0 : index
    %c0_44 = arith.constant 0 : index
    %c0_45 = arith.constant 0 : index
    %119 = vector.load %arg9[%c0_43, %c0_44, %c0_45] : memref<1x8x32xf32, #tpu.memory_space<vmem>>, vector<1x8x32xf32>
    %120 = vector.shape_cast %119 : vector<1x8x32xf32> to vector<8x32xf32>
    %121 = vector.shape_cast %118 : vector<8x32xf32> to vector<1x8x32xf32>
    tpu.vector_store %arg9[%c0_43, %c0_44, %c0_45], %121 {strides = array<i32>} : memref<1x8x32xf32, #tpu.memory_space<vmem>>, vector<1x8x32xf32>,
    return
  }
  func.func @transform_0(%arg0: i32) -> (i32, i32, i32) {
    %c0_i32 = arith.constant 0 : i32
    %c0_i32_0 = arith.constant 0 : i32
    %c0_i32_1 = arith.constant 0 : i32
    return %arg0, %c0_i32, %c0_i32_0 : i32, i32, i32
  }
  func.func @transform_1(%arg0: i32) -> (i32, i32, i32) {
    %c0_i32 = arith.constant 0 : i32
    %c0_i32_0 = arith.constant 0 : i32
    %c0_i32_1 = arith.constant 0 : i32
    return %arg0, %c0_i32, %c0_i32_0 : i32, i32, i32
  }
  func.func @transform_2(%arg0: i32) -> (i32, i32) {
    %c0_i32 = arith.constant 0 : i32
    %c0_i32_0 = arith.constant 0 : i32
    %c0_i32_1 = arith.constant 0 : i32
    return %c0_i32, %c0_i32_0 : i32, i32
  }
  func.func @transform_3(%arg0: i32) -> (i32, i32) {
    %c0_i32 = arith.constant 0 : i32
    %c0_i32_0 = arith.constant 0 : i32
    %c0_i32_1 = arith.constant 0 : i32
    return %c0_i32, %c0_i32_0 : i32, i32
  }
  func.func @transform_4(%arg0: i32) -> (i32, i32) {
    %c0_i32 = arith.constant 0 : i32
    %c0_i32_0 = arith.constant 0 : i32
    %c0_i32_1 = arith.constant 0 : i32
    return %c0_i32, %c0_i32_0 : i32, i32
  }
  func.func @transform_5(%arg0: i32) -> (i32, i32) {
    %c0_i32 = arith.constant 0 : i32
    %c0_i32_0 = arith.constant 0 : i32
    %c0_i32_1 = arith.constant 0 : i32
    return %c0_i32, %c0_i32_0 : i32, i32
  }
  func.func @transform_6(%arg0: i32) -> (i32, i32) {
    %c0_i32 = arith.constant 0 : i32
    %c0_i32_0 = arith.constant 0 : i32
    %c0_i32_1 = arith.constant 0 : i32
    return %c0_i32, %c0_i32_0 : i32, i32
  }
  func.func @transform_7(%arg0: i32) -> (i32, i32) {
    %c0_i32 = arith.constant 0 : i32
    %c0_i32_0 = arith.constant 0 : i32
    %c0_i32_1 = arith.constant 0 : i32
    return %c0_i32, %c0_i32_0 : i32, i32
  }
  func.func @transform_8(%arg0: i32) -> (i32, i32, i32) {
    %c0_i32 = arith.constant 0 : i32
    %c0_i32_0 = arith.constant 0 : i32
    %c0_i32_1 = arith.constant 0 : i32
    return %arg0, %c0_i32, %c0_i32_0 : i32, i32, i32
  }
}

</mosaic_0001>

<bundles_post_ra>
// kernel: decoder_layer.5
= control target key start
LH: loop header
LB: loop body
LE: loop exit
PB: predicated region body
PF: predicated region fallthrough
CT: control target
= control target key end

     0   :  { %vm32_vm0 = vcmask 261120   ;;  %s440_s0 = inlined_call_operand.vmem [shape: f32[16,32], index: 0, kind: input, shape index: {}]   ;;  %s441_s1 = inlined_call_operand.vmem [shape: f32[1,32], index: 1, kind: input, shape index: {}]   ;;  %s442_s2 = inlined_call_operand.vmem [shape: f32[1,32], index: 2, kind: input, shape index: {}]   ;;  %s443_s3 = inlined_call_operand.vmem [shape: bf16[32,64], index: 3, kind: input, shape index: {}]   ;;  %s444_s4 = inlined_call_operand.vmem [shape: f32[1,64], index: 4, kind: input, shape index: {}]   ;;  %s445_s5 = inlined_call_operand.vmem [shape: bf16[64,32], index: 5, kind: input, shape index: {}]   ;;  %s446_s6 = inlined_call_operand.vmem [shape: f32[1,32], index: 6, kind: input, shape index: {}]   ;;  %s447_s7 = inlined_call_operand.hbm [shape: f32[16,32], index: 7, kind: output, shape index: {}]  }
   0x1   :  { %v378_v0 = vld [vmem:[%s440_s0] sm:$0xff]  ;;  %v383_v1 = vld [vmem:[%s440_s0 + $0x8] sm:$0xff] }
   0x2   :  { %v33_v2 = vsel %vm32_vm0, %v378_v0, 0.0  ;;  %v36_v3 = vsel %vm32_vm0, %v383_v1, 0.0 }
   0x3   :  { %34 = vadd.xlane.f32.xlu0 %v33_v2 }
   0x4   :  { %12 = vsyncpa [#allocation3], 0  ;;  %v296_v14 = vld [vmem:[%s443_s3] sm:$0xff]   ;;  %v330_v15 = vmov 0.0   ;;  %v297_v16 = vld [vmem:[%s443_s3 + $0x8] sm:$0xff]   ;;  %vm331_vm1 = vmmov 0  }
   0x5   :  { %271 = vmatprep.subr.bf16.mxu0 %v330_v15  ;;  %279 = vmatprep.subr.bf16.mxu1 %v330_v15  ;;  %v298_v17 = vld [vmem:[%s445_s5] sm:$0xff]   ;;  %v299_v18 = vld [vmem:[%s445_s5 + $0x8] sm:$0xff]   ;;  %v300_v36 = vld [vmem:[%s445_s5 + $0x10] sm:$0xff]   ;;  %vm186_vm2 = vcmask 523264  }
   0x6   :  { %272 = vmatpush3.bf16.msra.mxu0 %v296_v14  ;;  %275 = vmatprep.mubr.msk.bf16.mxu0 %vm331_vm1, %v330_v15  ;;  %v251_v27 = vld [vmem:[%s441_s1] ss:$0 sm:$0xff]  ;;  %v301_v37 = vld [vmem:[%s445_s5 + $0x18] sm:$0xff]   ;;  %s332_s5 = smov [#allocation2]  }
   0x7   :  { %37 = vadd.xlane.f32.xlu0 %v36_v3  ;;  %273 = vmatprep.subr.bf16.mxu0 %v330_v15  ;;  %v252_v31 = vld [vmem:[%s442_s2] ss:$0 sm:$0xff] }
   0x8   :  { %287 = vmatprep.mubr.msk.bf16.mxu1 %vm331_vm1, %v330_v15  ;;  %280 = vmatpush3.bf16.msra.mxu1 %v298_v17  ;;  %v253_v38 = vld [vmem:[%s444_s4] ss:$0 sm:$0xff]  ;;  %s240_s4 = sshll.u32 %s332_s5, 4  ;;  %s241_s4 = int_to_ptr.vmem [resolvable:$true] %s240_s4 }
   0x9   :  { %281 = vmatprep.subr.bf16.mxu1 %v330_v15  ;;  %v257_v48 = vld [vmem:[%s446_s6] ss:$0 sm:$0xff]  ;;  %s306_s21 = scalar_lea.vmem %s241_s4, 256  ;;  %p311_p1 = scmp.lt.s32.totalorder %s241_s4, %s241_s4 }
   0xa   :  { %274 = vmatpush3.bf16.msra.mxu0 %v297_v16  ;;  %p307_p0 = scmp.ne.s32.totalorder %s241_s4, %s306_s21  ;;  %p312_p2 = scmp.lt.s32.totalorder %s306_s21, %s306_s21 }
   0xc   :  { %282 = vmatpush3.bf16.msra.mxu1 %v299_v18  ;;  %p313_p3 = por %p312_p2, %p311_p1 }
   0xd   :  { %283 = vmatprep.subr.bf16.mxu1 %v330_v15 }
   0xe   :  { %p314_p4 = pnand %p313_p3, %p307_p0 }
  0x10   :  { %284 = vmatpush3.bf16.msra.mxu1 %v300_v36 }
  0x11   :  { %285 = vmatprep.subr.bf16.mxu1 %v330_v15 }
  0x14   :  { %286 = vmatpush3.bf16.msra.mxu1 %v301_v37 }
  0x90   :  { %v35_v4 = vpop.xlane.xlu0 %34 }
  0x91   :  { %v40_v5 = vmul.f32 0.03125, %v35_v4 }
  0x93   :  { %v42_v6 = vsub.f32 %v378_v0, %v40_v5 }
  0x94   :  { %v38_v7 = vpop.xlane.xlu0 %37 }
  0x95   :  { %v41_v8 = vmul.f32 0.03125, %v38_v7  ;;  %v44_v9 = vmul.f32 %v42_v6, %v42_v6 }
  0x97   :  { %v43_v10 = vsub.f32 %v383_v1, %v41_v8  ;;  %v46_v11 = vsel %vm32_vm0, %v44_v9, 0.0 }
  0x98   :  { %47 = vadd.xlane.f32.xlu1 %v46_v11 }
  0x99   :  { %v45_v12 = vmul.f32 %v43_v10, %v43_v10 }
  0x9b   :  { %v49_v13 = vsel %vm32_vm0, %v45_v12, 0.0 }
  0x9c   :  { %50 = vadd.xlane.f32.xlu1 %v49_v13 }
 0x125   :  { %v48_v19 = vpop.xlane.xlu1 %47 }
 0x126   :  { %v52_v20 = vmul.f32 0.03125, %v48_v19 }
 0x128   :  { %v54_v21 = vadd.f32 1e-06, %v52_v20 }
 0x129   :  { %v51_v22 = vpop.xlane.xlu1 %50 }
 0x12a   :  { %302 = vrsqrt.f32 %v54_v21  ;;  %v53_v23 = vmul.f32 0.03125, %v51_v22 }
 0x12c   :  { %v55_v24 = vadd.f32 1e-06, %v53_v23 }
 0x12e   :  { %304 = vrsqrt.f32 %v55_v24 }
 0x134   :  { %v303_v25 = vpop.eup %302 }
 0x135   :  { %v58_v26 = vmul.f32 %v303_v25, %v42_v6 }
 0x137   :  { %v66_v30 = vmul.f32 %v251_v27, %v58_v26 }
 0x138   :  { %v305_v28 = vpop.eup %304 }
 0x139   :  { %v59_v29 = vmul.f32 %v305_v28, %v43_v10  ;;  %v74_v33 = vadd.f32 %v252_v31, %v66_v30 }
 0x13b   :  { %v67_v32 = vmul.f32 %v251_v27, %v59_v29 }
 0x13d   :  { %v75_v34 = vadd.f32 %v252_v31, %v67_v32 }
 0x13f   :  { %v76_v35 = vpack.c.bf16 %v75_v34, %v74_v33 }
 0x141   :  { %276 = vmatmul.mubr.msk.bf16.vlgmr.msra.gmra.mrb[0].mxu0 %vm32_vm0, %v76_v35 }
 0x214   :  { %v137_v39 = vpop.f32.mrb[0].mxu0 }
 0x215   :  { %v138_v40 = vadd.f32 %v253_v38, %v137_v39  ;;  %v277_v41 = vpop.f32.mrb[1].mxu0 }
 0x216   :  { %v140_v42 = vpop.f32.mrb[2].mxu0 }
 0x217   :  { %v141_v43 = vadd.f32 %v253_v38, %v140_v42  ;;  %v278_v44 = vpop.f32.mrb[3].mxu0  ;;  %v144_v45 = vmax.f32 %v138_v40, 0.0 }
 0x219   :  { %v145_v46 = vmax.f32 %v141_v43, 0.0 }
 0x21b   :  { %v146_v47 = vpack.c.bf16 %v145_v46, %v144_v45 }
 0x21d   :  { %288 = vmatmul.mubr.msk.bf16.vlgmr.msra.gmra.mrb[0].mxu1 %vm186_vm2, %v146_v47 }
 0x2f0   :  { %v224_v49 = vpop.f32.mrb[0].mxu1 }
 0x2f1   :  { %v225_v50 = vadd.f32 %v257_v48, %v224_v49  ;;  %v289_v51 = vpop.f32.mrb[1].mxu1 }
 0x2f2   :  { %v227_v52 = vpop.f32.mrb[2].mxu1 }
 0x2f3   :  { %v231_v53 = vadd.f32 %v225_v50, %v378_v0  ;;  %v228_v54 = vadd.f32 %v257_v48, %v227_v52  ;;  %v290_v55 = vpop.f32.mrb[3].mxu1 }
 0x2f5   :  { %233 = vst.msk [vmem:[#allocation2] sm:$0xff] %vm32_vm0, %v231_v53  ;;  %v232_v56 = vadd.f32 %v228_v54, %v383_v1 }
 0x2f7   :  { %234 = vst.msk [vmem:[#allocation2 + $0x8] sm:$0xff] %vm32_vm0, %v232_v56 }
 0x2f8   :  { %317 = shalt.err (!%p314_p4)
}
 0x2f9   :  { %s318_s23 = scalar_lea.hbm %s447_s7, 256 }
 0x2fa   :  { %p319_p5 = scmp.ne.s32.totalorder %s447_s7, %s318_s23  ;;  %p322_p6 = scmp.lt.u32.totalorder %s318_s23, %s447_s7 }
 0x2fc   :  { %p324_p7 = pnand %p322_p6, %p319_p5 }
 0x2fe   :  { %327 = shalt.err (!%p324_p7)
}
 0x2ff   :  { %s333_s0 = smov 128   ;;  %s334_s28 = smov 8  }
 0x300   :  { %246 = dma.vmem_to_hbm [thread:$0]  %s241_s4, 256, %s447_s7, [#allocation3], %s333_s0, %s333_s0, %s334_s28  }
 0x301   :  { %328 = dma.done.wait [#allocation3], 256  }
 0x302   :  { %329 = vsyncadd [#allocation3], 4294967040 }
 0x303   :  { %250 = vsyncpa [#allocation3], 1 }

// kernel: decoder_layer.3
= control target key start
LH: loop header
LB: loop body
LE: loop exit
PB: predicated region body
PF: predicated region fallthrough
CT: control target
= control target key end

     0   :  { %13 = vsyncpa [#allocation3], 0  ;;  %s2010_s0 = inlined_call_operand.hbm [shape: f32[2,8,32], index: 0, kind: input, shape index: {}]   ;;  %s2011_s1 = inlined_call_operand.hbm [shape: f32[2,8,8], index: 1, kind: input, shape index: {}]   ;;  %s2012_s2 = inlined_call_operand.vmem [shape: f32[1,32], index: 2, kind: input, shape index: {}]   ;;  %s2013_s3 = inlined_call_operand.vmem [shape: f32[1,32], index: 3, kind: input, shape index: {}]   ;;  %s2014_s4 = inlined_call_operand.vmem [shape: bf16[32,96], index: 4, kind: input, shape index: {}]   ;;  %s2015_s5 = inlined_call_operand.hbm [shape: f32[1,96], index: 5, kind: input, shape index: {}]   ;;  %s2016_s6 = inlined_call_operand.vmem [shape: bf16[32,32], index: 6, kind: input, shape index: {}]   ;;  %s2017_s7 = inlined_call_operand.vmem [shape: f32[1,32], index: 7, kind: input, shape index: {}]   ;;  %s2018_s8 = inlined_call_operand.vmem [shape: f32[2,8,32], index: 8, kind: output, shape index: {}]  }
   0x1   :  { %15 = vsyncpa [#allocation3 + $0x1], 0 }
   0x2   :  { %16 = vsyncpa [#allocation5], 0 }
   0x3   :  { %18 = vsyncpa [#allocation5 + $0x1], 0  ;;  %s1720_s27 = smov 0   ;;  %s1722_s28 = smov 0  }
   0x4   :  { %s1724_s29 = smov 0   ;;  %s1726_s30 = smov 0  }
   0x5 LB: > { %s1739_s9 = sadd.s32 4294967295, %s1654_s30   ;;  %p44_p0 = scmp.ne.s32.totalorder %s1646_s28, %s1642_s27  ;;  %s1654_s30 = sphi %s1726_s30, %s2036_s30   ;;  %s1650_s29 = sphi %s1724_s29, %s2035_s29   ;;  %s1646_s28 = sphi %s1722_s28, %s2034_s28   ;;  %s1642_s27 = sphi %s1720_s27, %s2033_s27  }
   0x6   : > { %p2019_p1 = scmp.eq.s32.totalorder %s1739_s9, 0  ;;  %p1317_p2 = scmp.ge.s32.totalorder %s1654_s30, 1 }
   0x7   : > { %p233_p3 = scmp.lt.s32.totalorder %s1654_s30, 3  ;;  %s1656_s12 = smov [#allocation6]  }
   0x8   : > { %p1747_p4 = por %p2019_p1, %p44_p0  ;;  %s255_s13 = sshll.u32 %s1656_s12, 4  ;;  %s256_s13 = int_to_ptr.vmem [resolvable:$true] %s255_s13 }
   0x9   : > { %p1751_p5 = pnand %p1317_p2, %p233_p3  ;;  %s1758_s14 = sadd.s32 1, %s1654_s30  }
   0xa   : > { %s2022_s10 = scalar_select %p1747_p4, 1, 0 }
   0xb   : > { %s2023_s11 = scalar_select %p1751_p5, 1, 0 }
   0xc   : > { %p1439_p6 = pneg %p1751_p5  ;;  %s28_s16 = ssub.s32 %s1654_s30, %s1758_s14 }
   0xd   : > { %p1768_p8 = scmp.eq.s32.totalorder %s28_s16, 0  ;;  %s31_s18 = sadd.s32 1, %s1650_s29 }
   0xe   : > { %p1762_p7 = pnand %p1439_p6, %p2019_p1  ;;  %s1524_s21 = scalar_lea.hbm %s2015_s5, 16 }
   0xf   : > { %s2025_s17 = scalar_select %p1768_p8, 1, 0 }
  0x10   : > { %p1525_p10 = scmp.ne.s32.totalorder %s2015_s5, %s1524_s21  ;;  %p1526_p11 = pneg %p1762_p7 }
  0x11   : > { %p1531_p0 = scmp.lt.u32.totalorder %s1524_s21, %s2015_s5 }
  0x12   : > { %p1527_p12 = pnand %p1526_p11, %p1525_p10 }
  0x14   : > { %p1528_p13 = pneg %p1527_p12 }
  0x16   : > { %p1533_p2 = pnand %p1531_p0, %p1528_p13 }
  0x18   : > { %1536 = shalt.err (!%p1533_p2)
}
  0x19   : > { %s1537_s26 = scalar_lea.vmem %s256_s13, 16  ;;  %s1544_s27 = scalar_lea.vmem %s256_s13, 32 }
  0x1a   : > { %p1538_p3 = scmp.ne.s32.totalorder %s256_s13, %s1537_s26  ;;  %p1545_p9 = scmp.lt.s32.totalorder %s256_s13, %s256_s13 }
  0x1b   : > { %p1546_p4 = scmp.lt.s32.totalorder %s1544_s27, %s1537_s26 }
  0x1c   : > { %p1540_p6 = pnand %p1538_p3, %p1526_p11 }
  0x1d   : > { %p1547_p5 = por %p1546_p4, %p1545_p9 }
  0x1e   : > { %p1541_p1 = pneg %p1540_p6 }
  0x20   : > { %p1548_p8 = pnand %p1547_p5, %p1541_p1 }
  0x22   : > { %1551 = shalt.err (!%p1548_p8)
}
  0x23   : > { %1442 = dma.hbm_to_vmem [thread:$0]  (!%p1762_p7), %s2015_s5, 16, %s256_s13, [#allocation5]  }
  0x24   : > { %p2026_p10 = scmp.ne.s32.totalorder %s2025_s17, 0  ;;  %p39_p1 = scmp.eq.s32.totalorder %s1654_s30, 0 }
  0x25   : > { %p1451_p4 = scmp.lt.s32.totalorder %s1654_s30, 2  ;;  %s272_s20 = sand.u32 1, %s1650_s29  }
  0x26   : > { %s1794_s19 = scalar_select %p2026_p10, %s1650_s29, %s31_s18  }
  0x27   : > { %s1321_s15 = sshll.u32 %s1654_s30, 7  ;;  %p2027_p5 = scmp.ne.s32.totalorder %s1650_s29, %s1646_s28 }
  0x28   : > { %s1803_s21 = sshll.u32 %s272_s20, 3  ;;  %s1810_s24 = scalar_lea.hbm %s2010_s0, %s1321_s15 }
  0x29   : > { %p40_p8 = por %p39_p1, %p2027_p5  ;;  %s276_s17 = scalar_lea.vmem [#allocation2], %s1803_s21 }
  0x2a   : > { %s283_s18 = sshll.u32 %s276_s17, 4  ;;  %s273_s25 = scalar_lea.sflag [#allocation3], %s272_s20  ;;  %s1817_s18 = int_to_ptr.vmem [resolvable:$true] %s283_s18 }
  0x2b   : > { %p1812_p7 = pnand %p1451_p4, %p40_p8  ;;  %s1552_s26 = scalar_lea.hbm %s1810_s24, 128 }
  0x2c   : > { %p1553_p9 = scmp.ne.s32.totalorder %s1810_s24, %s1552_s26  ;;  %s1557_s16 = scalar_lea.hbm %s2010_s0, 256 }
  0x2d   : > { %p1554_p11 = pneg %p1812_p7  ;;  %p1558_p0 = scmp.lt.u32.totalorder %s1810_s24, %s2010_s0 }
  0x2e   : > { %p1559_p2 = scmp.lt.u32.totalorder %s1557_s16, %s1552_s26  ;;  %p1561_p6 = scmp.lt.u32.totalorder %s1552_s26, %s1810_s24 }
  0x2f   : > { %p1555_p12 = pnand %p1554_p11, %p1553_p9 }
  0x30   : > { %p1560_p3 = por %p1559_p2, %p1558_p0 }
  0x31   : > { %p1556_p13 = pneg %p1555_p12 }
  0x32   : > { %p1562_p10 = por %p1561_p6, %p1560_p3 }
  0x34   : > { %p1563_p1 = pnand %p1562_p10, %p1556_p13 }
  0x36   : > { %1566 = shalt.err (!%p1563_p1)
}
  0x37   : > { %s1567_s20 = scalar_lea.vmem %s1817_s18, 128  ;;  %s1657_s17 = smov [#allocation2]  }
  0x38   : > { %p1568_p4 = scmp.ne.s32.totalorder %s1817_s18, %s1567_s20  ;;  %s1572_s27 = sshll.u32 %s1657_s17, 4  ;;  %s1573_s27 = int_to_ptr.vmem [resolvable:$false] %s1572_s27 }
  0x39   : > { %s1574_s12 = scalar_lea.vmem %s1573_s27, 256  ;;  %p1575_p9 = scmp.lt.s32.totalorder %s1817_s18, %s1573_s27 }
  0x3a   : > { %p1570_p5 = pnand %p1568_p4, %p1554_p11  ;;  %p1576_p12 = scmp.lt.s32.totalorder %s1574_s12, %s1567_s20 }
  0x3c   : > { %p1571_p8 = pneg %p1570_p5  ;;  %p1577_p0 = por %p1576_p12, %p1575_p9 }
  0x3e   : > { %p1578_p2 = pnand %p1577_p0, %p1571_p8 }
  0x40   : > { %1581 = shalt.err (!%p1578_p2)
}
  0x41   : > { %1446 = dma.hbm_to_vmem [thread:$0]  (!%p1812_p7), %s1810_s24, 128, %s1817_s18, %s273_s25  }
  0x42   : > { %s1849_s22 = scalar_lea.hbm %s2011_s1, %s1321_s15  ;;  %s290_s23 = sand.u32 1, %s1654_s30  }
  0x43   : > { %s294_s20 = scalar_lea.vmem [#allocation4], %s1803_s21  ;;  %s291_s27 = scalar_lea.sflag [#allocation5], %s290_s23 }
  0x44   : > { %s301_s17 = sshll.u32 %s294_s20, 4  ;;  %s1582_s12 = scalar_lea.hbm %s1849_s22, 128  ;;  %s302_s17 = int_to_ptr.vmem [resolvable:$true] %s301_s17 }
  0x45   : > { %p1583_p13 = scmp.ne.s32.totalorder %s1849_s22, %s1582_s12  ;;  %s1587_s15 = scalar_lea.hbm %s2011_s1, 256 }
  0x46   : > { %p1588_p10 = scmp.lt.u32.totalorder %s1849_s22, %s2011_s1  ;;  %p1589_p1 = scmp.lt.u32.totalorder %s1587_s15, %s1582_s12 }
  0x47   : > { %p1585_p3 = pnand %p1583_p13, %p1554_p11  ;;  %p1591_p5 = scmp.lt.u32.totalorder %s1582_s12, %s1849_s22 }
  0x48   : > { %p1590_p4 = por %p1589_p1, %p1588_p10 }
  0x49   : > { %p1586_p6 = pneg %p1585_p3 }
  0x4a   : > { %p1592_p8 = por %p1591_p5, %p1590_p4 }
  0x4c   : > { %p1593_p9 = pnand %p1592_p8, %p1586_p6 }
  0x4e   : > { %1596 = shalt.err (!%p1593_p9)
}
  0x4f   : > { %s1597_s30 = scalar_lea.vmem %s302_s17, 128  ;;  %s1658_s21 = smov [#allocation4]  }
  0x50   : > { %p1598_p12 = scmp.ne.s32.totalorder %s302_s17, %s1597_s30  ;;  %s1602_s16 = sshll.u32 %s1658_s21, 4  ;;  %s1603_s16 = int_to_ptr.vmem [resolvable:$false] %s1602_s16 }
  0x51   : > { %s1604_s23 = scalar_lea.vmem %s1603_s16, 256  ;;  %p1605_p13 = scmp.lt.s32.totalorder %s302_s17, %s1603_s16 }
  0x52   : > { %p1600_p0 = pnand %p1598_p12, %p1554_p11  ;;  %p1606_p3 = scmp.lt.s32.totalorder %s1604_s23, %s1597_s30 }
  0x54   : > { %p1601_p2 = pneg %p1600_p0  ;;  %p1607_p1 = por %p1606_p3, %p1605_p13 }
  0x56   : > { %p1608_p10 = pnand %p1607_p1, %p1601_p2 }
  0x58   : > { %1611 = shalt.err (!%p1608_p10)
}
  0x59   : > { %1449 = dma.hbm_to_vmem [thread:$0]  (!%p1812_p7), %s1849_s22, 128, %s302_s17, %s291_s27  }
  0x5a   : > { %p2029_p6 = scmp.ne.s32.totalorder %s2023_s11, 0 }
  0x5b   : > { %s312_s20 = sand.u32 (!%p2029_p6), 1, %s1646_s28   ;;  %p2030_p11 = scmp.ne.s32.totalorder (!%p2029_p6), %s2022_s10, 0 }
  0x5c   : > { %310 = sbr.rel (%p2029_p6) target bundleno = 2369 (0x941), region = 52  ;;  %s1875_s12 = sshll.u32 (!%p2029_p6), %s312_s20, 3 }
  0x5d   : > { %s313_s24 = scalar_lea.sflag (!%p2029_p6), [#allocation3], %s312_s20  ;;  %s316_s18 = scalar_lea.vmem (!%p2029_p6), [#allocation2], %s1875_s12 }
  0x63   : > { %1629 = dma.done.wait (%p2030_p11), %s313_s24, 128  }
  0x64   : > { %1631 = vsyncadd (%p2030_p11), %s313_s24, 4294967168  ;;  %s321_s13 = sand.u32 1, %s1739_s9   ;;  %s325_s11 = scalar_lea.vmem [#allocation4], %s1875_s12 }
  0x65   : > { %s322_s22 = scalar_lea.sflag [#allocation5], %s321_s13 }
  0x66   : > { %1633 = dma.done.wait (%p2030_p11), %s322_s22, 128  }
  0x67   : > { %1635 = vsyncadd (%p2030_p11), %s322_s22, 4294967168  ;;  %p2031_p7 = scmp.eq.s32.totalorder %s1739_s9, 0 }
  0x69   : > { %1637 = dma.done.wait (%p2031_p7), [#allocation5], 16   ;;  %p2032_p4 = pmov %p2031_p7 }
  0x6a   : > { %vm374_vm0 = vcmask 261120   ;;  %v1892_v0 = vld [vmem:[%s316_s18] sm:$0xff]  ;;  %v1502_v7 = vld [vmem:[%s2014_s4] sm:$0xff]   ;;  %v1659_v8 = vmov 0.0   ;;  %vm1660_vm1 = vmmov 0   ;;  %v1503_v9 = vld [vmem:[%s2014_s4 + $0x8] sm:$0xff]  }
  0x6b   : > { %1639 = vsyncadd (%p2032_p4), [#allocation5], 4294967280  ;;  %v375_v1 = vsel %vm374_vm0, %v1892_v0, 0.0  ;;  %1375 = vmatprep.subr.bf16.mxu0 %v1659_v8  ;;  %1379 = vmatprep.mubr.msk.bf16.mxu0 %vm1660_vm1, %v1659_v8  ;;  %v1329_v14 = vld [vmem:[%s2012_s2] ss:$0 sm:$0xff]  ;;  %s1661_s16 = smov 64  }
  0x6c   : > { %376 = vadd.xlane.f32.xlu0 %v375_v1  ;;  %1376 = vmatpush3.bf16.msra.mxu0 %v1502_v7  ;;  %v1330_v16 = vld [vmem:[%s2013_s3] ss:$0 sm:$0xff]  ;;  %v1331_v20 = vld [vmem:[#allocation6] ss:$0 sm:$0xff]  ;;  %s1662_s23 = smov 96   ;;  %s1663_s20 = smov 88  }
  0x6d   : > { %1388 = vmatprep.subr.mxu1 %v1659_v8  ;;  %1377 = vmatprep.subr.bf16.mxu0 %v1659_v8  ;;  %s1664_s24 = smov 120   ;;  %vm475_vm2 = vcmask 64512   ;;  %v470_v29 = vld [vmem:[%s325_s11] sm:$0xff]  ;;  %s1665_s18 = smov 80   ;;  %vm1146_vm3 = vcmask 130048   ;;  %vm1148_vm4 = vcmask 195584  }
  0x6e   : > { %1390 = vmatprep.mubr.msk.f32.mxu1 %vm1660_vm1, %v1659_v8  ;;  %s1666_s13 = smov 112   ;;  %s1667_s12 = smov 72  }
  0x6f   : > { %s1668_s22 = smov 104   ;;  %s1669_s11 = smov 48  }
  0x70   : > { %1378 = vmatpush3.bf16.msra.mxu0 %v1503_v9  ;;  %s1670_s10 = smov 40   ;;  %s1671_s17 = smov 56  }
  0x71   : > { %1383 = vmatprep.subr.mxu0 %v1659_v8  ;;  %s1672_s30 = smov 8   ;;  %s1673_s21 = smov 16  }
  0x72   : > { %p366_p5 = scmp.lt.s32.totalorder %s1739_s9, 1 }
  0x74   : > { %s2038_s9 = smov (!%p366_p5, %s1739_s9), 1 }
  0xf9   : > { %v377_v2 = vpop.xlane.xlu0 %376 }
  0xfa   : > { %v379_v3 = vmul.f32 0.03125, %v377_v2 }
  0xfc   : > { %v380_v4 = vsub.f32 %v1892_v0, %v379_v3 }
  0xfe   : > { %v381_v5 = vmul.f32 %v380_v4, %v380_v4 }
 0x100   : > { %v382_v6 = vsel %vm374_vm0, %v381_v5, 0.0 }
 0x101   : > { %383 = vadd.xlane.f32.xlu0 %v382_v6 }
 0x18e   : > { %v384_v10 = vpop.xlane.xlu0 %383 }
 0x18f   : > { %v385_v11 = vmul.f32 0.03125, %v384_v10 }
 0x191   : > { %v386_v12 = vadd.f32 1e-06, %v385_v11 }
 0x193   : > { %1506 = vrsqrt.f32 %v386_v12 }
 0x19d   : > { %v1507_v13 = vpop.eup %1506 }
 0x19e   : > { %v388_v15 = vmul.f32 %v1507_v13, %v380_v4 }
 0x1a0   : > { %v395_v17 = vmul.f32 %v1329_v14, %v388_v15 }
 0x1a2   : > { %v402_v18 = vadd.f32 %v1330_v16, %v395_v17 }
 0x1a4   : > { %v403_v19 = vpack.c.bf16 %v402_v18, %v402_v18 }
 0x1a6   : > { %1380 = vmatmul.mubr.msk.bf16.vlgmr.msra.gmra.mrb[0].mxu0 %vm374_vm0, %v403_v19 }
 0x1a7   : > { %1385 = vmatprep.mubr.msk.f32.mxu0 %vm1660_vm1, %v1659_v8 }
 0x279   : > { %v464_v21 = vpop.f32.mrb[0].mxu0 }
 0x27a   : > { %v1921_v22 = vadd.f32 %v1331_v20, %v464_v21  ;;  %v1381_v23 = vpop.f32.mrb[1].mxu0 }
 0x27b   : > { %v467_v24 = vpop.f32.mrb[2].mxu0 }
 0x27c   : > { %562 = vrot.lane.b32.xlu0 %v1921_v22, %s1661_s16  ;;  %473 = vrot.lane.b32.xlu1 %v1921_v22, %s1662_s23  ;;  %v1382_v25 = vpop.f32.mrb[3].mxu0  ;;  %v471_v26 = vmul.f32 0.35355338, %v1921_v22  ;;  %s1674_s16 = smov 24  }
 0x280   : > { %640 = vrot.lane.b32.xlu0 %v1921_v22, %s1663_s20 }
 0x284   : > { %638 = vrot.lane.b32.xlu0 %v471_v26, %s1664_s24  ;;  %s1328_s24 = sshll.u32 %s2038_s9, 3 }
 0x2ee   : > { %v563_v27 = vpop.permute.xlu0 %562  ;;  %v474_v28 = vpop.permute.xlu1 %473 }
 0x2ef   : > { %1384 = vmatpush3.xpose.msk.msra.mxu0 %vm475_vm2, %v474_v28  ;;  %1389 = vmatpush3.msra.mxu1 %v563_v27  ;;  %v1504_v27 = vld [vmem:[%s2016_s6] sm:$0xff]   ;;  %v1505_v28 = vld [vmem:[%s2016_s6 + $0x8] sm:$0xff]  }
 0x2f0   : > { %1393 = vmatprep.subr.mxu1 %v1659_v8  ;;  %1398 = vmatprep.subr.mxu0 %v1659_v8 }
 0x2f2   : > { %1386 = vmatmul.mubr.msk.f32.vlgmr.msra.gmra.mrb[4].mxu0 %vm475_vm2, %v471_v26  ;;  %v641_v39 = vpop.permute.xlu0 %640 }
 0x2f3   : > { %1400 = vmatprep.mubr.msk.f32.mxu0 %vm1660_vm1, %v1659_v8 }
 0x2f6   : > { %v639_v40 = vpop.permute.xlu0 %638 }
 0x3c5   : > { %v547_v30 = vpop.f32.mrb[4].mxu0 }
 0x3c6   : > { %v548_v31 = vadd.f32 %v547_v30, %v470_v29  ;;  %v1387_v32 = vpop.f32.mrb[5].mxu0 }
 0x3c8   : > { %v551_v33 = vsel %vm475_vm2, %v548_v31, -inf }
 0x3c9   : > { %552 = vmax.xlane.f32.xlu1 %v551_v33 }
 0x3da   : > { %805 = vrot.lane.b32.xlu1 %v1921_v22, %s1665_s18 }
 0x456   : > { %v553_v34 = vpop.xlane.xlu1 %552 }
 0x457   : > { %v554_v35 = vsub.f32 %v548_v31, %v553_v34 }
 0x459   : > { %v555_v36 = vmul.f32 1.442695, %v554_v35 }
 0x45a   : > { %v806_v45 = vpop.permute.xlu1 %805 }
 0x45b   : > { %1508 = vpow2.f32 %v555_v36 }
 0x465   : > { %v1509_v37 = vpop.eup %1508 }
 0x466   : > { %v557_v38 = vsel %vm475_vm2, %v1509_v37, 0.0 }
 0x467   : > { %558 = vadd.xlane.f32.xlu0 %v557_v38 }
 0x47d   : > { %803 = vrot.lane.b32.xlu0 %v471_v26, %s1666_s13 }
 0x481   : > { %970 = vrot.lane.b32.xlu0 %v1921_v22, %s1667_s12  ;;  %s369_s12 = scalar_lea.vmem %s2018_s8, %s1328_s24 }
 0x485   : > { %968 = vrot.lane.b32.xlu0 %v471_v26, %s1668_s22 }
 0x4f4   : > { %v559_v41 = vpop.xlane.xlu0 %558 }
 0x4f5   : > { %1510 = vrcp.f32 %v559_v41  ;;  %v1347_v41 = vld [vmem:[%s2017_s7] ss:$0 sm:$0xff] }
 0x4f8   : > { %v804_v44 = vpop.permute.xlu0 %803 }
 0x4fc   : > { %v971_v46 = vpop.permute.xlu0 %970 }
 0x4ff   : > { %v1511_v42 = vpop.eup %1510 }
 0x500   : > { %v561_v43 = vmul.f32 %v1511_v42, %v1509_v37  ;;  %v969_v47 = vpop.permute.xlu0 %968 }
 0x502   : > { %1391 = vmatmul.mubr.msk.f32.vlgmr.msra.gmra.mrb[0].mxu1 %vm475_vm2, %v561_v43 }
 0x503   : > { %1394 = vmatpush3.xpose.msk.msra.mxu1 %vm475_vm2, %v641_v39  ;;  %1395 = vmatprep.mubr.msk.f32.mxu1 %vm1660_vm1, %v1659_v8 }
 0x504   : > { %1403 = vmatprep.subr.mxu1 %v1659_v8 }
 0x506   : > { %1396 = vmatmul.mubr.msk.f32.vlgmr.msra.gmra.mrb[2].mxu1 %vm475_vm2, %v639_v40 }
 0x507   : > { %1404 = vmatpush3.xpose.msk.msra.mxu1 %vm475_vm2, %v806_v45  ;;  %1405 = vmatprep.mubr.msk.f32.mxu1 %vm1660_vm1, %v1659_v8 }
 0x508   : > { %1413 = vmatprep.subr.mxu1 %v1659_v8 }
 0x50a   : > { %1406 = vmatmul.mubr.msk.f32.vlgmr.msra.gmra.mrb[4].mxu1 %vm475_vm2, %v804_v44 }
 0x50b   : > { %1414 = vmatpush3.xpose.msk.msra.mxu1 %vm475_vm2, %v971_v46  ;;  %1415 = vmatprep.mubr.msk.f32.mxu1 %vm1660_vm1, %v1659_v8 }
 0x50c   : > { %1423 = vmatprep.subr.bf16.mxu1 %v1659_v8 }
 0x50e   : > { %1416 = vmatmul.mubr.msk.f32.vlgmr.msra.gmra.mrb[6].mxu1 %vm475_vm2, %v969_v47 }
 0x50f   : > { %1427 = vmatprep.mubr.msk.bf16.mxu1 %vm1660_vm1, %v1659_v8  ;;  %1424 = vmatpush3.bf16.msra.mxu1 %v1504_v27 }
 0x510   : > { %1425 = vmatprep.subr.bf16.mxu1 %v1659_v8 }
 0x513   : > { %1426 = vmatpush3.bf16.msra.mxu1 %v1505_v28 }
 0x5d5   : > { %v1957_v48 = vpop.f32.mrb[0].mxu1 }
 0x5d6   : > { %v1392_v49 = vpop.f32.mrb[1].mxu1 }
 0x5d9   : > { %v712_v50 = vpop.f32.mrb[2].mxu1 }
 0x5da   : > { %v713_v51 = vadd.f32 %v712_v50, %v470_v29  ;;  %v1397_v52 = vpop.f32.mrb[3].mxu1 }
 0x5dc   : > { %v716_v53 = vsel %vm475_vm2, %v713_v51, -inf }
 0x5dd   : > { %717 = vmax.xlane.f32.xlu0 %v716_v53  ;;  %v877_v54 = vpop.f32.mrb[4].mxu1 }
 0x5de   : > { %v878_v55 = vadd.f32 %v877_v54, %v470_v29  ;;  %v1407_v56 = vpop.f32.mrb[5].mxu1 }
 0x5e0   : > { %v881_v57 = vsel %vm475_vm2, %v878_v55, -inf }
 0x5e1   : > { %882 = vmax.xlane.f32.xlu1 %v881_v57  ;;  %v1042_v58 = vpop.f32.mrb[6].mxu1 }
 0x5e2   : > { %v1043_v59 = vadd.f32 %v1042_v58, %v470_v29  ;;  %v1417_v60 = vpop.f32.mrb[7].mxu1 }
 0x5e4   : > { %v1046_v61 = vsel %vm475_vm2, %v1043_v59, -inf }
 0x5e5   : > { %1047 = vmax.xlane.f32.xlu0 %v1046_v61 }
 0x5f2   : > { %892 = vrot.lane.b32.xlu1 %v1921_v22, %s1669_s11 }
 0x66a   : > { %v718_v62 = vpop.xlane.xlu0 %717 }
 0x66b   : > { %v719_v63 = vsub.f32 %v713_v51, %v718_v62 }
 0x66d   : > { %v720_v1 = vmul.f32 1.442695, %v719_v63 }
 0x66e   : > { %v883_v2 = vpop.xlane.xlu1 %882 }
 0x66f   : > { %1512 = vpow2.f32 %v720_v1  ;;  %v884_v3 = vsub.f32 %v878_v55, %v883_v2 }
 0x671   : > { %v885_v4 = vmul.f32 1.442695, %v884_v3 }
 0x672   : > { %v1048_v5 = vpop.xlane.xlu0 %1047  ;;  %v893_v16 = vpop.permute.xlu1 %892 }
 0x673   : > { %1514 = vpow2.f32 %v885_v4  ;;  %v1049_v6 = vsub.f32 %v1043_v59, %v1048_v5 }
 0x675   : > { %v1050_v7 = vmul.f32 1.442695, %v1049_v6 }
 0x677   : > { %1516 = vpow2.f32 %v1050_v7 }
 0x679   : > { %v1513_v9 = vpop.eup %1512 }
 0x67a   : > { %v722_v10 = vsel %vm475_vm2, %v1513_v9, 0.0 }
 0x67b   : > { %723 = vadd.xlane.f32.xlu0 %v722_v10 }
 0x67d   : > { %v1515_v11 = vpop.eup %1514 }
 0x67e   : > { %v887_v12 = vsel %vm475_vm2, %v1515_v11, 0.0 }
 0x67f   : > { %888 = vadd.xlane.f32.xlu0 %v887_v12 }
 0x681   : > { %v1517_v13 = vpop.eup %1516 }
 0x682   : > { %v1052_v14 = vsel %vm475_vm2, %v1517_v13, 0.0 }
 0x683   : > { %1053 = vadd.xlane.f32.xlu1 %v1052_v14 }
 0x694   : > { %1057 = vrot.lane.b32.xlu1 %v1921_v22, %s1670_s10 }
 0x695   : > { %727 = vrot.lane.b32.xlu0 %v1921_v22, %s1671_s17 }
 0x708   : > { %v724_v15 = vpop.xlane.xlu0 %723 }
 0x709   : > { %1518 = vrcp.f32 %v724_v15 }
 0x70c   : > { %v889_v17 = vpop.xlane.xlu0 %888 }
 0x70d   : > { %1520 = vrcp.f32 %v889_v17 }
 0x710   : > { %v1054_v18 = vpop.xlane.xlu1 %1053  ;;  %v728_v19 = vpop.permute.xlu0 %727 }
 0x711   : > { %1522 = vrcp.f32 %v1054_v18  ;;  %1399 = vmatpush3.msra.mxu0 %v728_v19 }
 0x712   : > { %1408 = vmatprep.subr.mxu0 %v1659_v8 }
 0x713   : > { %v1519_v20 = vpop.eup %1518 }
 0x714   : > { %v726_v21 = vmul.f32 %v1519_v20, %v1513_v9  ;;  %v1058_v24 = vpop.permute.xlu1 %1057 }
 0x716   : > { %1401 = vmatmul.mubr.msk.f32.vlgmr.msra.gmra.mrb[6].mxu0 %vm475_vm2, %v726_v21 }
 0x717   : > { %v1521_v23 = vpop.eup %1520  ;;  %1409 = vmatpush3.msra.mxu0 %v893_v16  ;;  %1410 = vmatprep.mubr.msk.f32.mxu0 %vm1660_vm1, %v1659_v8 }
 0x718   : > { %v891_v22 = vmul.f32 %v1521_v23, %v1515_v11  ;;  %1418 = vmatprep.subr.mxu0 %v1659_v8 }
 0x71a   : > { %1411 = vmatmul.mubr.msk.f32.vlgmr.msra.gmra.mrb[8].mxu0 %vm475_vm2, %v891_v22 }
 0x71b   : > { %v1523_v25 = vpop.eup %1522  ;;  %1419 = vmatpush3.msra.mxu0 %v1058_v24  ;;  %1420 = vmatprep.mubr.msk.f32.mxu0 %vm1660_vm1, %v1659_v8 }
 0x71c   : > { %v1056_v26 = vmul.f32 %v1523_v25, %v1517_v13 }
 0x71e   : > { %1421 = vmatmul.mubr.msk.f32.vlgmr.msra.gmra.mrb[10].mxu0 %vm475_vm2, %v1056_v26 }
 0x7e9   : > { %v799_v29 = vpop.f32.mrb[6].mxu0 }
 0x7ea   : > { %1134 = vrot.lane.b32.xlu1 %v799_v29, %s1672_s30  ;;  %v1402_v30 = vpop.f32.mrb[7].mxu0 }
 0x7ed   : > { %v964_v31 = vpop.f32.mrb[8].mxu0 }
 0x7ee   : > { %1138 = vrot.lane.b32.xlu0 %v964_v31, %s1673_s21  ;;  %v1412_v32 = vpop.f32.mrb[9].mxu0 }
 0x7f1   : > { %v1129_v33 = vpop.f32.mrb[10].mxu0 }
 0x7f2   : > { %1142 = vrot.lane.b32.xlu1 %v1129_v33, %s1674_s16  ;;  %v1422_v34 = vpop.f32.mrb[11].mxu0 }
 0x85c   : > { %v1135_v8 = vpop.permute.xlu1 %1134 }
 0x85d   : > { %v1145_v36 = vsel %vm475_vm2, %v1957_v48, %v1135_v8 }
 0x860   : > { %v1139_v35 = vpop.permute.xlu0 %1138 }
 0x861   : > { %v1147_v37 = vsel %vm1146_vm3, %v1145_v36, %v1139_v35 }
 0x864   : > { %v1143_v38 = vpop.permute.xlu1 %1142 }
 0x865   : > { %v1149_v39 = vsel %vm1148_vm4, %v1147_v37, %v1143_v38 }
 0x866   : > { %v1150_v40 = vpack.c.bf16 %v1149_v39, %v1149_v39 }
 0x868   : > { %1428 = vmatmul.mubr.msk.bf16.vlgmr.msra.gmra.mrb[8].mxu1 %vm374_vm0, %v1150_v40 }
 0x93b   : > { %v1211_v42 = vpop.f32.mrb[8].mxu1 }
 0x93c   : > { %v1212_v43 = vadd.f32 %v1347_v41, %v1211_v42  ;;  %v1429_v44 = vpop.f32.mrb[9].mxu1 }
 0x93d   : > { %v1214_v45 = vpop.f32.mrb[10].mxu1 }
 0x93e   : > { %v1217_v46 = vadd.f32 %v1212_v43, %v1892_v0  ;;  %v1430_v47 = vpop.f32.mrb[11].mxu1 }
 0x940   : > { %1218 = vst.msk [vmem:[%s369_s12] sm:$0xff] %vm374_vm0, %v1217_v46 }
 0x941 PF: > { %p21_p8 = scmp.ge.s32.totalorder %s1758_s14, 4   ;;  %s2033_s27 = smov %s1646_s28 }
 0x942   : > { %s2034_s28 = smov %s1650_s29  ;;  %s2035_s29 = smov %s1794_s19 }
 0x943   : > { %s2036_s30 = smov %s1758_s14  ;;  %23 = sbr.rel (!%p21_p8) target bundleno = 5 (0x5), region = 109 }
 0x94a   :  { %1238 = vsyncpa [#allocation3], 1 }
 0x94b   :  { %1240 = vsyncpa [#allocation3 + $0x1], 1 }
 0x94c   :  { %1241 = vsyncpa [#allocation5], 1 }
 0x94d   :  { %1243 = vsyncpa [#allocation5 + $0x1], 1 }

// kernel: decoder_layer.4
= control target key start
LH: loop header
LB: loop body
LE: loop exit
PB: predicated region body
PF: predicated region fallthrough
CT: control target
= control target key end

     0   :  { %s1658_s17 = smov 0   ;;  %s1804_s0 = inlined_call_operand.vmem [shape: f32[2,8,32], index: 0, kind: input, shape index: {}]   ;;  %s1805_s1 = inlined_call_operand.vmem [shape: f32[2,8,32], index: 1, kind: input, shape index: {}]   ;;  %s1806_s2 = inlined_call_operand.vmem [shape: f32[2,1,8], index: 2, kind: input, shape index: {}]   ;;  %s1807_s3 = inlined_call_operand.vmem [shape: f32[1,32], index: 3, kind: input, shape index: {}]   ;;  %s1808_s4 = inlined_call_operand.vmem [shape: f32[1,32], index: 4, kind: input, shape index: {}]   ;;  %s1809_s5 = inlined_call_operand.vmem [shape: bf16[32,32], index: 5, kind: input, shape index: {}]   ;;  %s1810_s6 = inlined_call_operand.vmem [shape: f32[1,32], index: 6, kind: input, shape index: {}]   ;;  %s1811_s7 = inlined_call_operand.vmem [shape: bf16[32,64], index: 7, kind: input, shape index: {}]   ;;  %s1812_s8 = inlined_call_operand.vmem [shape: f32[1,64], index: 8, kind: input, shape index: {}]   ;;  %s1813_s9 = inlined_call_operand.vmem [shape: bf16[32,32], index: 9, kind: input, shape index: {}]   ;;  %s1814_s10 = inlined_call_operand.vmem [shape: f32[1,32], index: 10, kind: input, shape index: {}]   ;;  %s1815_s11 = inlined_call_operand.vmem [shape: f32[2,8,32], index: 11, kind: output, shape index: {}]  }
   0x1 LB: > { %s1408_s18 = sadd.s32 4294967295, %s1584_s17   ;;  %p1412_p0 = scmp.ge.s32.totalorder %s1584_s17, 1  ;;  %s1584_s17 = sphi %s1658_s17, %s21_s17  }
   0x2   : > { %p353_p1 = scmp.lt.s32.totalorder %s1584_s17, 3 }
   0x4   : > { %p354_p2 = pnand %p1412_p0, %p353_p1 }
   0x5   : > { %p398_p3 = scmp.lt.s32.totalorder (!%p354_p2), %s1408_s18, 1  ;;  %vm418_vm0 = vcmask (!%p354_p2), 261120   ;;  %v1554_v7 = vld [vmem:[%s1809_s5] sm:$0xff] (!%p354_p2)   ;;  %v1586_v8 = vmov (!%p354_p2), 0.0   ;;  %vm1587_vm1 = vmmov (!%p354_p2), 0   ;;  %v1555_v9 = vld [vmem:[%s1809_s5 + $0x8] sm:$0xff] (!%p354_p2)  }
   0x6   : > { %357 = sbr.rel (%p354_p2) target bundleno = 2172 (0x87c), region = 64  ;;  %1470 = vmatprep.subr.bf16.mxu1 (!%p354_p2), %v1586_v8  ;;  %1474 = vmatprep.mubr.msk.bf16.mxu1 (!%p354_p2), %vm1587_vm1, %v1586_v8  ;;  %v1416_v14 = vld [vmem:[%s1807_s3] ss:$0 sm:$0xff] (!%p354_p2)  ;;  %v1557_v22 = vld [vmem:[%s1811_s7 + $0x8] sm:$0xff] (!%p354_p2)   ;;  %vm589_vm2 = vcmask (!%p354_p2), 64512   ;;  %s1588_s26 = smov (!%p354_p2), 96  }
   0x7   : > { %1471 = vmatpush3.bf16.msra.mxu1 (!%p354_p2), %v1554_v7  ;;  %1486 = vmatprep.subr.mxu0 (!%p354_p2), %v1586_v8  ;;  %v1417_v16 = vld [vmem:[%s1808_s4] ss:$0 sm:$0xff] (!%p354_p2)  ;;  %s1589_s27 = smov (!%p354_p2), 112   ;;  %s1590_s28 = smov (!%p354_p2), 104   ;;  %vm1261_vm3 = vcmask (!%p354_p2), 130048   ;;  %vm1263_vm4 = vcmask (!%p354_p2), 195584  }
   0x8   : > { %1472 = vmatprep.subr.bf16.mxu1 (!%p354_p2), %v1586_v8  ;;  %1488 = vmatprep.mubr.msk.f32.mxu0 (!%p354_p2), %vm1587_vm1, %v1586_v8  ;;  %v1556_v19 = vld [vmem:[%s1811_s7] sm:$0xff] (!%p354_p2)   ;;  %s1591_s13 = smov (!%p354_p2), 120   ;;  %s1593_s14 = smov (!%p354_p2), 72  }
   0x9   : > { %v1418_v28 = vld [vmem:[%s1810_s6] ss:$0 sm:$0xff] (!%p354_p2)  ;;  %s1594_s15 = smov (!%p354_p2), 80   ;;  %s1595_s23 = smov (!%p354_p2), 8  }
   0xa   : > { %v1422_v29 = vld [vmem:[%s1812_s8] ss:$0 sm:$0xff] (!%p354_p2)  ;;  %s1596_s24 = smov (!%p354_p2), 16   ;;  %s1597_s25 = smov (!%p354_p2), 24  }
   0xb   : > { %1473 = vmatpush3.bf16.msra.mxu1 (!%p354_p2), %v1555_v9 }
   0xc   : > { %1478 = vmatprep.subr.bf16.mxu1 (!%p354_p2), %v1586_v8 }
   0xd   : > { %s1817_s18 = smov (!%p398_p3, %s1408_s18), 1 }
   0xe   : > { %s1669_s19 = sshll.u32 %s1817_s18, 3  ;;  %s408_s12 = scalar_lea.vmem %s1806_s2, %s1817_s18 }
   0xf   : > { %s401_s22 = scalar_lea.vmem %s1804_s0, %s1669_s19  ;;  %s405_s16 = scalar_lea.vmem %s1805_s1, %s1669_s19  ;;  %v1426_v38 = vld [vmem:[%s408_s12] ss:$0 sm:$0xff] }
  0x10   : > { %v1675_v0 = vld [vmem:[%s401_s22] sm:$0xff]  ;;  %s1592_s18 = smov 88   ;;  %s412_s30 = scalar_lea.vmem %s1815_s11, %s1669_s19 }
  0x11   : > { %v419_v1 = vsel %vm418_vm0, %v1675_v0, 0.0  ;;  %v415_v21 = vld [vmem:[%s405_s16] sm:$0xff] }
  0x12   : > { %420 = vadd.xlane.f32.xlu0 %v419_v1  ;;  %v514_v23 = vpack.c.bf16 %v415_v21, %v415_v21 }
  0x9f   : > { %v421_v2 = vpop.xlane.xlu0 %420 }
  0xa0   : > { %v423_v3 = vmul.f32 0.03125, %v421_v2 }
  0xa2   : > { %v424_v4 = vsub.f32 %v1675_v0, %v423_v3 }
  0xa4   : > { %v425_v5 = vmul.f32 %v424_v4, %v424_v4 }
  0xa6   : > { %v426_v6 = vsel %vm418_vm0, %v425_v5, 0.0 }
  0xa7   : > { %427 = vadd.xlane.f32.xlu0 %v426_v6 }
 0x134   : > { %v428_v10 = vpop.xlane.xlu0 %427 }
 0x135   : > { %v429_v11 = vmul.f32 0.03125, %v428_v10 }
 0x137   : > { %v430_v12 = vadd.f32 1e-06, %v429_v11 }
 0x139   : > { %1560 = vrsqrt.f32 %v430_v12 }
 0x143   : > { %v1561_v13 = vpop.eup %1560 }
 0x144   : > { %v432_v15 = vmul.f32 %v1561_v13, %v424_v4 }
 0x146   : > { %v439_v17 = vmul.f32 %v1416_v14, %v432_v15 }
 0x148   : > { %v446_v18 = vadd.f32 %v1417_v16, %v439_v17 }
 0x14a   : > { %v447_v20 = vpack.c.bf16 %v446_v18, %v446_v18 }
 0x14c   : > { %1475 = vmatmul.mubr.msk.bf16.vlgmr.msra.gmra.mrb[0].mxu1 %vm418_vm0, %v447_v20 }
 0x14d   : > { %1479 = vmatpush3.bf16.msra.mxu1 %v1556_v19  ;;  %1482 = vmatprep.mubr.msk.bf16.mxu1 %vm1587_vm1, %v1586_v8 }
 0x14e   : > { %1480 = vmatprep.subr.bf16.mxu1 %v1586_v8 }
 0x151   : > { %1481 = vmatpush3.bf16.msra.mxu1 %v1557_v22 }
 0x152   : > { %1501 = vmatprep.subr.mxu1 %v1586_v8 }
 0x154   : > { %1483 = vmatmul.mubr.msk.bf16.vlgmr.msra.gmra.mrb[4].mxu1 %vm418_vm0, %v514_v23 }
 0x155   : > { %1503 = vmatprep.mubr.msk.f32.mxu1 %vm1587_vm1, %v1586_v8 }
 0x21f   : > { %v508_v24 = vpop.f32.mrb[0].mxu1 }
 0x220   : > { %v1476_v25 = vpop.f32.mrb[1].mxu1  ;;  %v509_v30 = vadd.f32 %v1418_v28, %v508_v24 }
 0x221   : > { %v511_v26 = vpop.f32.mrb[2].mxu1 }
 0x222   : > { %v1477_v27 = vpop.f32.mrb[3].mxu1  ;;  %v582_v36 = vmul.f32 0.35355338, %v509_v30 }
 0x227   : > { %v575_v31 = vpop.f32.mrb[4].mxu1 }
 0x228   : > { %v1725_v32 = vadd.f32 %v1422_v29, %v575_v31  ;;  %v1484_v33 = vpop.f32.mrb[5].mxu1 }
 0x229   : > { %v578_v34 = vpop.f32.mrb[6].mxu1 }
 0x22a   : > { %677 = vrot.lane.b32.xlu0 %v1725_v32, %s1588_s26  ;;  %v1485_v35 = vpop.f32.mrb[7].mxu1  ;;  %1487 = vmatpush3.xpose.msk.msra.mxu0 %vm589_vm2, %v1725_v32 }
 0x22b   : > { %1491 = vmatprep.subr.mxu0 %v1586_v8 }
 0x22d   : > { %1489 = vmatmul.mubr.msk.f32.vlgmr.msra.gmra.mrb[0].mxu0 %vm589_vm2, %v582_v36 }
 0x22e   : > { %918 = vrot.lane.b32.xlu0 %v582_v36, %s1589_s27  ;;  %1493 = vmatprep.mubr.msk.f32.mxu0 %vm1587_vm1, %v1586_v8 }
 0x232   : > { %1083 = vrot.lane.b32.xlu0 %v582_v36, %s1590_s28 }
 0x29c   : > { %v678_v37 = vpop.permute.xlu0 %677 }
 0x29d   : > { %1492 = vmatpush3.msra.mxu0 %v678_v37  ;;  %v1559_v37 = vld [vmem:[%s1813_s9 + $0x8] sm:$0xff]  }
 0x29e   : > { %1496 = vmatprep.subr.mxu0 %v1586_v8 }
 0x2a0   : > { %v919_v54 = vpop.permute.xlu0 %918 }
 0x2a4   : > { %v1084_v56 = vpop.permute.xlu0 %1083 }
 0x300   : > { %v662_v39 = vpop.f32.mrb[0].mxu0 }
 0x301   : > { %v663_v40 = vadd.f32 %v1426_v38, %v662_v39  ;;  %v1490_v41 = vpop.f32.mrb[1].mxu0 }
 0x303   : > { %v666_v42 = vsel %vm589_vm2, %v663_v40, -inf }
 0x304   : > { %667 = vmax.xlane.f32.xlu1 %v666_v42 }
 0x315   : > { %755 = vrot.lane.b32.xlu1 %v1725_v32, %s1591_s13 }
 0x319   : > { %753 = vrot.lane.b32.xlu1 %v582_v36, %s1591_s13  ;;  %v1558_v36 = vld [vmem:[%s1813_s9] sm:$0xff]  }
 0x31d   : > { %920 = vrot.lane.b32.xlu1 %v1725_v32, %s1589_s27 }
 0x391   : > { %v668_v43 = vpop.xlane.xlu1 %667 }
 0x392   : > { %v669_v44 = vsub.f32 %v663_v40, %v668_v43 }
 0x394   : > { %v670_v45 = vmul.f32 1.442695, %v669_v44 }
 0x395   : > { %v756_v48 = vpop.permute.xlu1 %755 }
 0x396   : > { %1562 = vpow2.f32 %v670_v45 }
 0x399   : > { %v754_v49 = vpop.permute.xlu1 %753 }
 0x39d   : > { %v921_v50 = vpop.permute.xlu1 %920 }
 0x3a0   : > { %v1563_v46 = vpop.eup %1562 }
 0x3a1   : > { %v672_v47 = vsel %vm589_vm2, %v1563_v46, 0.0 }
 0x3a2   : > { %673 = vadd.xlane.f32.xlu1 %v672_v47 }
 0x3b3   : > { %1085 = vrot.lane.b32.xlu1 %v1725_v32, %s1590_s28 }
 0x42f   : > { %v674_v51 = vpop.xlane.xlu1 %673 }
 0x430   : > { %1564 = vrcp.f32 %v674_v51 }
 0x433   : > { %v1086_v55 = vpop.permute.xlu1 %1085 }
 0x43a   : > { %v1565_v52 = vpop.eup %1564 }
 0x43b   : > { %v676_v53 = vmul.f32 %v1565_v52, %v1563_v46 }
 0x43d   : > { %1494 = vmatmul.mubr.msk.f32.vlgmr.msra.gmra.mrb[2].mxu0 %vm589_vm2, %v676_v53 }
 0x43e   : > { %1497 = vmatpush3.xpose.msk.msra.mxu0 %vm589_vm2, %v756_v48  ;;  %1498 = vmatprep.mubr.msk.f32.mxu0 %vm1587_vm1, %v1586_v8 }
 0x43f   : > { %1506 = vmatprep.subr.mxu0 %v1586_v8 }
 0x441   : > { %1499 = vmatmul.mubr.msk.f32.vlgmr.msra.gmra.mrb[4].mxu0 %vm589_vm2, %v754_v49 }
 0x442   : > { %1507 = vmatpush3.xpose.msk.msra.mxu0 %vm589_vm2, %v921_v50  ;;  %1508 = vmatprep.mubr.msk.f32.mxu0 %vm1587_vm1, %v1586_v8  ;;  %v1439_v50 = vld [vmem:[%s1814_s10] ss:$0 sm:$0xff] }
 0x443   : > { %1516 = vmatprep.subr.mxu0 %v1586_v8 }
 0x445   : > { %1509 = vmatmul.mubr.msk.f32.vlgmr.msra.gmra.mrb[6].mxu0 %vm589_vm2, %v919_v54 }
 0x446   : > { %1517 = vmatpush3.xpose.msk.msra.mxu0 %vm589_vm2, %v1086_v55  ;;  %1518 = vmatprep.mubr.msk.f32.mxu0 %vm1587_vm1, %v1586_v8 }
 0x447   : > { %1526 = vmatprep.subr.bf16.mxu0 %v1586_v8 }
 0x449   : > { %1519 = vmatmul.mubr.msk.f32.vlgmr.msra.gmra.mrb[8].mxu0 %vm589_vm2, %v1084_v56 }
 0x44a   : > { %1530 = vmatprep.mubr.msk.bf16.mxu0 %vm1587_vm1, %v1586_v8  ;;  %1527 = vmatpush3.bf16.msra.mxu0 %v1558_v36 }
 0x44b   : > { %1528 = vmatprep.subr.bf16.mxu0 %v1586_v8 }
 0x44e   : > { %1529 = vmatpush3.bf16.msra.mxu0 %v1559_v37 }
 0x510   : > { %v1762_v57 = vpop.f32.mrb[2].mxu0 }
 0x511   : > { %v1495_v58 = vpop.f32.mrb[3].mxu0 }
 0x514   : > { %v827_v59 = vpop.f32.mrb[4].mxu0 }
 0x515   : > { %v828_v60 = vadd.f32 %v1426_v38, %v827_v59  ;;  %v1500_v61 = vpop.f32.mrb[5].mxu0 }
 0x517   : > { %v831_v62 = vsel %vm589_vm2, %v828_v60, -inf }
 0x518   : > { %832 = vmax.xlane.f32.xlu1 %v831_v62  ;;  %v992_v63 = vpop.f32.mrb[6].mxu0 }
 0x519   : > { %v993_v1 = vadd.f32 %v1426_v38, %v992_v63  ;;  %v1510_v2 = vpop.f32.mrb[7].mxu0 }
 0x51b   : > { %v996_v3 = vsel %vm589_vm2, %v993_v1, -inf }
 0x51c   : > { %997 = vmax.xlane.f32.xlu0 %v996_v3  ;;  %v1157_v4 = vpop.f32.mrb[8].mxu0 }
 0x51d   : > { %v1158_v5 = vadd.f32 %v1426_v38, %v1157_v4  ;;  %v1520_v6 = vpop.f32.mrb[9].mxu0 }
 0x51f   : > { %v1161_v7 = vsel %vm589_vm2, %v1158_v5, -inf }
 0x520   : > { %1162 = vmax.xlane.f32.xlu0 %v1161_v7 }
 0x529   : > { %842 = vrot.lane.b32.xlu1 %v1725_v32, %s1592_s18 }
 0x5a5   : > { %v833_v9 = vpop.xlane.xlu1 %832 }
 0x5a6   : > { %v834_v10 = vsub.f32 %v828_v60, %v833_v9 }
 0x5a8   : > { %v835_v11 = vmul.f32 1.442695, %v834_v10 }
 0x5a9   : > { %v843_v12 = vpop.permute.xlu1 %842  ;;  %v998_v13 = vpop.xlane.xlu0 %997 }
 0x5aa   : > { %1566 = vpow2.f32 %v835_v11  ;;  %v999_v14 = vsub.f32 %v993_v1, %v998_v13  ;;  %1502 = vmatpush3.msra.mxu1 %v843_v12 }
 0x5ab   : > { %1511 = vmatprep.subr.mxu1 %v1586_v8 }
 0x5ac   : > { %v1000_v15 = vmul.f32 1.442695, %v999_v14 }
 0x5ad   : > { %v1163_v16 = vpop.xlane.xlu0 %1162 }
 0x5ae   : > { %1568 = vpow2.f32 %v1000_v15  ;;  %v1164_v17 = vsub.f32 %v1158_v5, %v1163_v16 }
 0x5b0   : > { %v1165_v18 = vmul.f32 1.442695, %v1164_v17 }
 0x5b2   : > { %1570 = vpow2.f32 %v1165_v18 }
 0x5b4   : > { %v1567_v19 = vpop.eup %1566 }
 0x5b5   : > { %v837_v20 = vsel %vm589_vm2, %v1567_v19, 0.0 }
 0x5b6   : > { %838 = vadd.xlane.f32.xlu0 %v837_v20 }
 0x5b8   : > { %v1569_v21 = vpop.eup %1568 }
 0x5b9   : > { %v1002_v22 = vsel %vm589_vm2, %v1569_v21, 0.0 }
 0x5ba   : > { %1003 = vadd.xlane.f32.xlu1 %v1002_v22 }
 0x5bc   : > { %v1571_v23 = vpop.eup %1570 }
 0x5bd   : > { %v1167_v24 = vsel %vm589_vm2, %v1571_v23, 0.0 }
 0x5be   : > { %1168 = vadd.xlane.f32.xlu0 %v1167_v24 }
 0x5cb   : > { %1172 = vrot.lane.b32.xlu1 %v1725_v32, %s1593_s14 }
 0x5d4   : > { %1007 = vrot.lane.b32.xlu0 %v1725_v32, %s1594_s15 }
 0x643   : > { %v839_v25 = vpop.xlane.xlu0 %838 }
 0x644   : > { %1572 = vrcp.f32 %v839_v25 }
 0x647   : > { %v1004_v26 = vpop.xlane.xlu1 %1003 }
 0x648   : > { %1574 = vrcp.f32 %v1004_v26 }
 0x64b   : > { %v1169_v27 = vpop.xlane.xlu0 %1168  ;;  %v1173_v32 = vpop.permute.xlu1 %1172 }
 0x64c   : > { %1576 = vrcp.f32 %v1169_v27 }
 0x64e   : > { %v1573_v28 = vpop.eup %1572 }
 0x64f   : > { %v841_v29 = vmul.f32 %v1573_v28, %v1567_v19  ;;  %v1008_v30 = vpop.permute.xlu0 %1007 }
 0x651   : > { %1504 = vmatmul.mubr.msk.f32.vlgmr.msra.gmra.mrb[8].mxu1 %vm589_vm2, %v841_v29 }
 0x652   : > { %v1575_v31 = vpop.eup %1574  ;;  %1512 = vmatpush3.msra.mxu1 %v1008_v30  ;;  %1513 = vmatprep.mubr.msk.f32.mxu1 %vm1587_vm1, %v1586_v8 }
 0x653   : > { %v1006_v33 = vmul.f32 %v1575_v31, %v1569_v21  ;;  %1521 = vmatprep.subr.mxu1 %v1586_v8 }
 0x655   : > { %1514 = vmatmul.mubr.msk.f32.vlgmr.msra.gmra.mrb[10].mxu1 %vm589_vm2, %v1006_v33 }
 0x656   : > { %v1577_v34 = vpop.eup %1576  ;;  %1522 = vmatpush3.msra.mxu1 %v1173_v32  ;;  %1523 = vmatprep.mubr.msk.f32.mxu1 %vm1587_vm1, %v1586_v8 }
 0x657   : > { %v1171_v35 = vmul.f32 %v1577_v34, %v1571_v23 }
 0x659   : > { %1524 = vmatmul.mubr.msk.f32.vlgmr.msra.gmra.mrb[12].mxu1 %vm589_vm2, %v1171_v35 }
 0x724   : > { %v914_v38 = vpop.f32.mrb[8].mxu1 }
 0x725   : > { %1249 = vrot.lane.b32.xlu1 %v914_v38, %s1595_s23  ;;  %v1505_v39 = vpop.f32.mrb[9].mxu1 }
 0x728   : > { %v1079_v40 = vpop.f32.mrb[10].mxu1 }
 0x729   : > { %1253 = vrot.lane.b32.xlu1 %v1079_v40, %s1596_s24  ;;  %v1515_v41 = vpop.f32.mrb[11].mxu1 }
 0x72c   : > { %v1244_v42 = vpop.f32.mrb[12].mxu1 }
 0x72d   : > { %1257 = vrot.lane.b32.xlu0 %v1244_v42, %s1597_s25  ;;  %v1525_v43 = vpop.f32.mrb[13].mxu1 }
 0x797   : > { %v1250_v44 = vpop.permute.xlu1 %1249 }
 0x798   : > { %v1260_v45 = vsel %vm589_vm2, %v1762_v57, %v1250_v44 }
 0x79b   : > { %v1254_v8 = vpop.permute.xlu1 %1253 }
 0x79c   : > { %v1262_v46 = vsel %vm1261_vm3, %v1260_v45, %v1254_v8 }
 0x79f   : > { %v1258_v47 = vpop.permute.xlu0 %1257 }
 0x7a0   : > { %v1264_v48 = vsel %vm1263_vm4, %v1262_v46, %v1258_v47 }
 0x7a1   : > { %v1265_v49 = vpack.c.bf16 %v1264_v48, %v1264_v48 }
 0x7a3   : > { %1531 = vmatmul.mubr.msk.bf16.vlgmr.msra.gmra.mrb[12].mxu0 %vm418_vm0, %v1265_v49 }
 0x876   : > { %v1326_v51 = vpop.f32.mrb[12].mxu0 }
 0x877   : > { %v1327_v52 = vadd.f32 %v1439_v50, %v1326_v51  ;;  %v1532_v53 = vpop.f32.mrb[13].mxu0 }
 0x878   : > { %v1329_v54 = vpop.f32.mrb[14].mxu0 }
 0x879   : > { %v1332_v55 = vadd.f32 %v1327_v52, %v1675_v0  ;;  %v1533_v56 = vpop.f32.mrb[15].mxu0 }
 0x87b   : > { %1333 = vst.msk [vmem:[%s412_s30] sm:$0xff] %vm418_vm0, %v1332_v55 }
 0x87c PF: > { %s21_s17 = sadd.s32 1, %s1584_s17  }
 0x87d   : > { %p18_p4 = scmp.ge.s32.totalorder %s21_s17, 4  }
 0x87f   :  { %20 = sbr.rel (!%p18_p4) target bundleno = 1 (0x1), region = 100 }

</bundles_post_ra>
